<compile_context>
chip_gen: v5e
topology: v5e:2x2
jax: 0.10.0
libtpu: 0.0.40
codegen_flags: <defaults>
</compile_context>

<pallas_src>
import functools
import math

import jax
import jax.numpy as jnp
from jax.experimental import pallas as pl
from jax.experimental.pallas import tpu as pltpu

NUM_LAYERS = 4


# ----------------------------------------------------------------------------
# Pallas kernel: one decode step = 4 stacked LSTM cells + Linear + LogSoftmax
# ----------------------------------------------------------------------------
def _decoder_step_kernel(x_ref,        # VMEM (B, H)  f32 : embedded tokens
                         h0_ref,       # VMEM (L, B, H) f32 : incoming hidden state
                         c0_ref,       # VMEM (L, B, H) f32 : incoming cell state
                         w_ref,        # VMEM (L, 2H, 4H) bf16 : [W_ih; W_hh]^T fused
                         b_ref,        # VMEM (L, B, 4H) f32 : b_ih + b_hh (pre-broadcast)
                         wcls_ref,     # VMEM (H, V) bf16 : classifier weight^T
                         bcls_ref,     # VMEM (B, V) f32 : classifier bias (pre-broadcast)
                         out_ref,      # VMEM (B, V) f32 : log-probs
                         h_ref,        # VMEM (L, B, H) f32 : new hidden state
                         c_ref,        # VMEM (L, B, H) f32 : new cell state
                         *, num_layers, hidden):
    H = hidden
    inp = x_ref[...]                                    # (B, H) f32
    for l in range(num_layers):
        h_prev = h0_ref[l]                              # (B, H) f32
        c_prev = c0_ref[l]
        # Fused input/recurrent projection: one K=2H matmul on the MXU (bf16
        # operands, f32 accumulation).  PyTorch gate order: i, f, g, o.
        xh = jnp.concatenate([inp, h_prev], axis=-1).astype(jnp.bfloat16)   # (B, 2H)
        gates = jnp.dot(xh, w_ref[l], preferred_element_type=jnp.float32) + b_ref[l]
        i_g = jax.nn.sigmoid(gates[:, 0 * H:1 * H])
        f_g = jax.nn.sigmoid(gates[:, 1 * H:2 * H])
        g_g = jnp.tanh(gates[:, 2 * H:3 * H])
        o_g = jax.nn.sigmoid(gates[:, 3 * H:4 * H])
        c_new = f_g * c_prev + i_g * g_g
        h_new = o_g * jnp.tanh(c_new)
        h_ref[l] = h_new
        c_ref[l] = c_new
        inp = h_new                                     # next layer consumes updated h

    # Classifier directly on the last layer's h_new (no re-read of h_ref).
    logits = (jnp.dot(inp.astype(jnp.bfloat16), wcls_ref[...],
                      preferred_element_type=jnp.float32)
              + bcls_ref[...])                          # (B, V) f32
    m = jnp.max(logits, axis=-1, keepdims=True)
    shifted = logits - m
    lse = jnp.log(jnp.sum(jnp.exp(shifted), axis=-1, keepdims=True))
    out_ref[...] = shifted - lse                        # log_softmax


def decoder_step_pallas(x_emb, h0, c0, w, b, wcls, bcls):
    """x_emb (B,H) f32, h0/c0 (L,B,H) f32, w (L,2H,4H) bf16, b (L,B,4H) f32,
    wcls (H,V) bf16, bcls (B,V) f32 -> (logp (B,V), h_new (L,B,H), c_new (L,B,H))."""
    B, H = x_emb.shape
    L = h0.shape[0]
    V = wcls.shape[1]
    vmem_spec = pl.BlockSpec(memory_space=pltpu.MemorySpace.VMEM)
    return pl.pallas_call(
        functools.partial(_decoder_step_kernel, num_layers=L, hidden=H),
        out_shape=(
            jax.ShapeDtypeStruct((B, V), jnp.float32),
            jax.ShapeDtypeStruct((L, B, H), jnp.float32),
            jax.ShapeDtypeStruct((L, B, H), jnp.float32),
        ),
        in_specs=[vmem_spec] * 7,
        out_specs=(vmem_spec, vmem_spec, vmem_spec),
    )(x_emb, h0, c0, w, b, wcls, bcls)


# ----------------------------------------------------------------------------
# Wrapper: Decoder.forward  (embedding gather is JAX glue, step is the kernel)
# ----------------------------------------------------------------------------
def decoder_forward_pallas(x_tokens, state, packed):
    hx, cx = state
    # nn.Embedding lookup (data-dependent row gather) -- plain-JAX glue.
    x_emb = jnp.take(packed["embedding"], x_tokens[:, 0], axis=0)          # (B, H)
    logp, h_new, c_new = decoder_step_pallas(
        x_emb, hx, cx, packed["w"], packed["b"], packed["wcls"], packed["bcls"])
    # CustomLSTM stacks the single step along dim=1 -> (B, 1, V) after classifier.
    return logp[:, None, :], (h_new, c_new)


# ----------------------------------------------------------------------------
# Pure-JAX reference with PyTorch-layout params (correctness check only).
# Matmul operands are cast to bf16 to mirror the kernel's MXU dtype; all
# accumulation and elementwise math is f32, as in the kernel.
# ----------------------------------------------------------------------------
def decoder_forward_reference(x_tokens, state, raw):
    hx, cx = state
    L, B, H = hx.shape
    inp = jnp.take(raw["embedding"], x_tokens[:, 0], axis=0)               # (B, H)
    h_out, c_out = [], []
    for l in range(L):
        gates = (jnp.dot(inp.astype(jnp.bfloat16),
                         raw["weight_ih"][l].T.astype(jnp.bfloat16),
                         preferred_element_type=jnp.float32)
                 + jnp.dot(hx[l].astype(jnp.bfloat16),
                           raw["weight_hh"][l].T.astype(jnp.bfloat16),
                           preferred_element_type=jnp.float32)
                 + raw["bias_ih"][l] + raw["bias_hh"][l])
        i_g = jax.nn.sigmoid(gates[:, :H])
        f_g = jax.nn.sigmoid(gates[:, H:2 * H])
        g_g = jnp.tanh(gates[:, 2 * H:3 * H])
        o_g = jax.nn.sigmoid(gates[:, 3 * H:])
        c_new = f_g * cx[l] + i_g * g_g
        h_new = o_g * jnp.tanh(c_new)
        h_out.append(h_new)
        c_out.append(c_new)
        inp = h_new
    h_fin = jnp.stack(h_out, 0)
    c_fin = jnp.stack(c_out, 0)
    logits = (jnp.dot(inp.astype(jnp.bfloat16), raw["cls_w"].T.astype(jnp.bfloat16),
                      preferred_element_type=jnp.float32) + raw["cls_b"])
    logp = jax.nn.log_softmax(logits, axis=-1)
    return logp[:, None, :], (h_fin, c_fin)


# ----------------------------------------------------------------------------
# Parameter init (PyTorch layouts) and packing for the kernel
# ----------------------------------------------------------------------------
def init_raw_params(key, vocab_size, hidden_size, num_layers):
    ks = jax.random.split(key, 4 * num_layers + 3)
    bound = 1.0 / math.sqrt(hidden_size)
    wih, whh, bih, bhh = [], [], [], []
    for l in range(num_layers):
        k1, k2, k3, k4 = ks[4 * l:4 * l + 4]
        wih.append(jax.random.uniform(k1, (4 * hidden_size, hidden_size),
                                      jnp.float32, -bound, bound))
        whh.append(jax.random.uniform(k2, (4 * hidden_size, hidden_size),
                                      jnp.float32, -bound, bound))
        bih.append(jax.random.uniform(k3, (4 * hidden_size,), jnp.float32, -bound, bound))
        bhh.append(jax.random.uniform(k4, (4 * hidden_size,), jnp.float32, -bound, bound))
    k_emb, k_cw, k_cb = ks[4 * num_layers:4 * num_layers + 3]
    return {
        "embedding": jax.random.normal(k_emb, (vocab_size, hidden_size), jnp.float32),
        "weight_ih": jnp.stack(wih),   # (L, 4H, H)
        "weight_hh": jnp.stack(whh),   # (L, 4H, H)
        "bias_ih": jnp.stack(bih),     # (L, 4H)
        "bias_hh": jnp.stack(bhh),     # (L, 4H)
        "cls_w": jax.random.uniform(k_cw, (vocab_size, hidden_size),
                                    jnp.float32, -bound, bound),   # (V, H)
        "cls_b": jax.random.uniform(k_cb, (vocab_size,), jnp.float32, -bound, bound),
    }


def pack_params(raw, batch_size):
    """Pack PyTorch-layout params into the kernel layout (done once, off the hot path)."""
    L, fourH, H = raw["weight_ih"].shape
    V = raw["cls_w"].shape[0]
    # gates = [x, h] @ [W_ih; W_hh]^T  ->  fused weight (L, 2H, 4H)
    w = jnp.concatenate([jnp.transpose(raw["weight_ih"], (0, 2, 1)),
                         jnp.transpose(raw["weight_hh"], (0, 2, 1))], axis=1)
    b = (raw["bias_ih"] + raw["bias_hh"])[:, None, :]                     # (L, 1, 4H)
    b = jnp.broadcast_to(b, (L, batch_size, fourH))                       # pre-broadcast
    bcls = jnp.broadcast_to(raw["cls_b"][None, :], (batch_size, V))
    return {
        "embedding": raw["embedding"],
        "w": w.astype(jnp.bfloat16),          # bf16 MXU operands, f32 accumulate
        "b": b.astype(jnp.float32),
        "wcls": raw["cls_w"].T.astype(jnp.bfloat16),   # (H, V)
        "bcls": bcls.astype(jnp.float32),
    }


if __name__ == "__main__":
    VOCAB, H, L, B = 256, 128, NUM_LAYERS, 8

    key = jax.random.PRNGKey(0)
    k_par, k_tok, k_h, k_c = jax.random.split(key, 4)

    raw = init_raw_params(k_par, VOCAB, H, L)
    packed = pack_params(raw, B)

    x_tokens = jax.random.randint(k_tok, (B, 1), 0, VOCAB, dtype=jnp.int32)
    h0 = jax.random.normal(k_h, (L, B, H), jnp.float32) * 0.1
    c0 = jax.random.normal(k_c, (L, B, H), jnp.float32) * 0.1

    fwd = jax.jit(decoder_forward_pallas)
    out, (hx, cx) = fwd(x_tokens, (h0, c0), packed)
    jax.block_until_ready((out, hx, cx))

    out_ref, (hx_ref, cx_ref) = decoder_forward_reference(x_tokens, (h0, c0), raw)

    assert out.shape == (B, 1, VOCAB)
    assert hx.shape == (L, B, H) and cx.shape == (L, B, H)
    assert jnp.allclose(out, out_ref, atol=2e-3, rtol=2e-3)
    assert jnp.allclose(hx, hx_ref, atol=2e-3, rtol=2e-3)
    assert jnp.allclose(cx, cx_ref, atol=2e-3, rtol=2e-3)

    print("KERNEL_OK")
</pallas_src>

<mosaic_0001>
module attributes {stable_mosaic.version = 11 : i64} {
  func.func @_decoder_step_kernel(%arg0: memref<8x128xf32, #tpu.memory_space<vmem>>, %arg1: memref<4x8x128xf32, #tpu.memory_space<vmem>>, %arg2: memref<4x8x128xf32, #tpu.memory_space<vmem>>, %arg3: memref<4x256x512xbf16, #tpu.memory_space<vmem>>, %arg4: memref<4x8x512xf32, #tpu.memory_space<vmem>>, %arg5: memref<128x256xbf16, #tpu.memory_space<vmem>>, %arg6: memref<8x256xf32, #tpu.memory_space<vmem>>, %arg7: memref<8x256xf32, #tpu.memory_space<vmem>>, %arg8: memref<4x8x128xf32, #tpu.memory_space<vmem>>, %arg9: memref<4x8x128xf32, #tpu.memory_space<vmem>>) attributes {dimension_semantics = [], scalar_prefetch = 0 : i64, scratch_operands = 0 : i64, tpu.core_type = #tpu.core_type<tc>} {
    %c0 = arith.constant 0 : index
    %c0_0 = arith.constant 0 : index
    %0 = vector.load %arg0[%c0, %c0_0] : memref<8x128xf32, #tpu.memory_space<vmem>>, vector<8x128xf32>
    %c0_1 = arith.constant 0 : index
    %c0_2 = arith.constant 0 : index
    %c0_3 = arith.constant 0 : index
    %1 = vector.load %arg1[%c0_1, %c0_2, %c0_3] : memref<4x8x128xf32, #tpu.memory_space<vmem>>, vector<1x8x128xf32>
    %2 = vector.shape_cast %1 : vector<1x8x128xf32> to vector<8x128xf32>
    %c0_4 = arith.constant 0 : index
    %c0_5 = arith.constant 0 : index
    %c0_6 = arith.constant 0 : index
    %3 = vector.load %arg2[%c0_4, %c0_5, %c0_6] : memref<4x8x128xf32, #tpu.memory_space<vmem>>, vector<1x8x128xf32>
    %4 = vector.shape_cast %3 : vector<1x8x128xf32> to vector<8x128xf32>
    %5 = tpu.concatenate %0, %2 in 1 : vector<8x128xf32>, vector<8x128xf32> -> vector<8x256xf32>
    %6 = arith.truncf %5 : vector<8x256xf32> to vector<8x256xbf16>
    %c0_7 = arith.constant 0 : index
    %c0_8 = arith.constant 0 : index
    %c0_9 = arith.constant 0 : index
    %7 = vector.load %arg3[%c0_7, %c0_8, %c0_9] : memref<4x256x512xbf16, #tpu.memory_space<vmem>>, vector<1x256x512xbf16>
    %8 = vector.shape_cast %7 : vector<1x256x512xbf16> to vector<256x512xbf16>
    %cst = arith.constant dense<0.000000e+00> : vector<8x512xf32>
    %9 = tpu.matmul %6, %8, %cst {dimension_numbers = #tpu.dot_dimension_numbers<[1], [0], [0], [1], [0, 0, 1, 1], [], []>} : vector<8x256xbf16>, vector<256x512xbf16>, vector<8x512xf32> -> vector<8x512xf32>
    %c0_10 = arith.constant 0 : index
    %c0_11 = arith.constant 0 : index
    %c0_12 = arith.constant 0 : index
    %10 = vector.load %arg4[%c0_10, %c0_11, %c0_12] : memref<4x8x512xf32, #tpu.memory_space<vmem>>, vector<1x8x512xf32>
    %11 = vector.shape_cast %10 : vector<1x8x512xf32> to vector<8x512xf32>
    %12 = arith.addf %9, %11 : vector<8x512xf32>
    %13 = vector.extract_strided_slice %12 {offsets = [0, 0], sizes = [8, 128], strides = [1, 1]} : vector<8x512xf32> to vector<8x128xf32>
    %14 = arith.negf %13 : vector<8x128xf32>
    %15 = math.exp %14 : vector<8x128xf32>
    %cst_13 = arith.constant 1.000000e+00 : f32
    %16 = vector.broadcast %cst_13 : f32 to vector<8x128xf32>
    %17 = arith.addf %16, %15 : vector<8x128xf32>
    %18 = arith.divf %16, %17 : vector<8x128xf32>
    %19 = vector.extract_strided_slice %12 {offsets = [0, 128], sizes = [8, 128], strides = [1, 1]} : vector<8x512xf32> to vector<8x128xf32>
    %20 = arith.negf %19 : vector<8x128xf32>
    %21 = math.exp %20 : vector<8x128xf32>
    %cst_14 = arith.constant 1.000000e+00 : f32
    %22 = vector.broadcast %cst_14 : f32 to vector<8x128xf32>
    %23 = arith.addf %22, %21 : vector<8x128xf32>
    %24 = arith.divf %22, %23 : vector<8x128xf32>
    %25 = vector.extract_strided_slice %12 {offsets = [0, 256], sizes = [8, 128], strides = [1, 1]} : vector<8x512xf32> to vector<8x128xf32>
    %26 = math.tanh %25 : vector<8x128xf32>
    %27 = vector.extract_strided_slice %12 {offsets = [0, 384], sizes = [8, 128], strides = [1, 1]} : vector<8x512xf32> to vector<8x128xf32>
    %28 = arith.negf %27 : vector<8x128xf32>
    %29 = math.exp %28 : vector<8x128xf32>
    %cst_15 = arith.constant 1.000000e+00 : f32
    %30 = vector.broadcast %cst_15 : f32 to vector<8x128xf32>
    %31 = arith.addf %30, %29 : vector<8x128xf32>
    %32 = arith.divf %30, %31 : vector<8x128xf32>
    %33 = arith.mulf %24, %4 : vector<8x128xf32>
    %34 = arith.mulf %18, %26 : vector<8x128xf32>
    %35 = arith.addf %33, %34 : vector<8x128xf32>
    %36 = math.tanh %35 : vector<8x128xf32>
    %37 = arith.mulf %32, %36 : vector<8x128xf32>
    %c0_16 = arith.constant 0 : index
    %c0_17 = arith.constant 0 : index
    %c0_18 = arith.constant 0 : index
    %38 = vector.load %arg8[%c0_16, %c0_17, %c0_18] : memref<4x8x128xf32, #tpu.memory_space<vmem>>, vector<1x8x128xf32>
    %39 = vector.shape_cast %38 : vector<1x8x128xf32> to vector<8x128xf32>
    %40 = vector.shape_cast %37 : vector<8x128xf32> to vector<1x8x128xf32>
    tpu.vector_store %arg8[%c0_16, %c0_17, %c0_18], %40 {strides = array<i32>} : memref<4x8x128xf32, #tpu.memory_space<vmem>>, vector<1x8x128xf32>,
    %c0_19 = arith.constant 0 : index
    %c0_20 = arith.constant 0 : index
    %c0_21 = arith.constant 0 : index
    %41 = vector.load %arg9[%c0_19, %c0_20, %c0_21] : memref<4x8x128xf32, #tpu.memory_space<vmem>>, vector<1x8x128xf32>
    %42 = vector.shape_cast %41 : vector<1x8x128xf32> to vector<8x128xf32>
    %43 = vector.shape_cast %35 : vector<8x128xf32> to vector<1x8x128xf32>
    tpu.vector_store %arg9[%c0_19, %c0_20, %c0_21], %43 {strides = array<i32>} : memref<4x8x128xf32, #tpu.memory_space<vmem>>, vector<1x8x128xf32>,
    %c1 = arith.constant 1 : index
    %c0_22 = arith.constant 0 : index
    %c0_23 = arith.constant 0 : index
    %44 = vector.load %arg1[%c1, %c0_22, %c0_23] : memref<4x8x128xf32, #tpu.memory_space<vmem>>, vector<1x8x128xf32>
    %45 = vector.shape_cast %44 : vector<1x8x128xf32> to vector<8x128xf32>
    %c1_24 = arith.constant 1 : index
    %c0_25 = arith.constant 0 : index
    %c0_26 = arith.constant 0 : index
    %46 = vector.load %arg2[%c1_24, %c0_25, %c0_26] : memref<4x8x128xf32, #tpu.memory_space<vmem>>, vector<1x8x128xf32>
    %47 = vector.shape_cast %46 : vector<1x8x128xf32> to vector<8x128xf32>
    %48 = tpu.concatenate %37, %45 in 1 : vector<8x128xf32>, vector<8x128xf32> -> vector<8x256xf32>
    %49 = arith.truncf %48 : vector<8x256xf32> to vector<8x256xbf16>
    %c1_27 = arith.constant 1 : index
    %c0_28 = arith.constant 0 : index
    %c0_29 = arith.constant 0 : index
    %50 = vector.load %arg3[%c1_27, %c0_28, %c0_29] : memref<4x256x512xbf16, #tpu.memory_space<vmem>>, vector<1x256x512xbf16>
    %51 = vector.shape_cast %50 : vector<1x256x512xbf16> to vector<256x512xbf16>
    %cst_30 = arith.constant dense<0.000000e+00> : vector<8x512xf32>
    %52 = tpu.matmul %49, %51, %cst_30 {dimension_numbers = #tpu.dot_dimension_numbers<[1], [0], [0], [1], [0, 0, 1, 1], [], []>} : vector<8x256xbf16>, vector<256x512xbf16>, vector<8x512xf32> -> vector<8x512xf32>
    %c1_31 = arith.constant 1 : index
    %c0_32 = arith.constant 0 : index
    %c0_33 = arith.constant 0 : index
    %53 = vector.load %arg4[%c1_31, %c0_32, %c0_33] : memref<4x8x512xf32, #tpu.memory_space<vmem>>, vector<1x8x512xf32>
    %54 = vector.shape_cast %53 : vector<1x8x512xf32> to vector<8x512xf32>
    %55 = arith.addf %52, %54 : vector<8x512xf32>
    %56 = vector.extract_strided_slice %55 {offsets = [0, 0], sizes = [8, 128], strides = [1, 1]} : vector<8x512xf32> to vector<8x128xf32>
    %57 = arith.negf %56 : vector<8x128xf32>
    %58 = math.exp %57 : vector<8x128xf32>
    %cst_34 = arith.constant 1.000000e+00 : f32
    %59 = vector.broadcast %cst_34 : f32 to vector<8x128xf32>
    %60 = arith.addf %59, %58 : vector<8x128xf32>
    %61 = arith.divf %59, %60 : vector<8x128xf32>
    %62 = vector.extract_strided_slice %55 {offsets = [0, 128], sizes = [8, 128], strides = [1, 1]} : vector<8x512xf32> to vector<8x128xf32>
    %63 = arith.negf %62 : vector<8x128xf32>
    %64 = math.exp %63 : vector<8x128xf32>
    %cst_35 = arith.constant 1.000000e+00 : f32
    %65 = vector.broadcast %cst_35 : f32 to vector<8x128xf32>
    %66 = arith.addf %65, %64 : vector<8x128xf32>
    %67 = arith.divf %65, %66 : vector<8x128xf32>
    %68 = vector.extract_strided_slice %55 {offsets = [0, 256], sizes = [8, 128], strides = [1, 1]} : vector<8x512xf32> to vector<8x128xf32>
    %69 = math.tanh %68 : vector<8x128xf32>
    %70 = vector.extract_strided_slice %55 {offsets = [0, 384], sizes = [8, 128], strides = [1, 1]} : vector<8x512xf32> to vector<8x128xf32>
    %71 = arith.negf %70 : vector<8x128xf32>
    %72 = math.exp %71 : vector<8x128xf32>
    %cst_36 = arith.constant 1.000000e+00 : f32
    %73 = vector.broadcast %cst_36 : f32 to vector<8x128xf32>
    %74 = arith.addf %73, %72 : vector<8x128xf32>
    %75 = arith.divf %73, %74 : vector<8x128xf32>
    %76 = arith.mulf %67, %47 : vector<8x128xf32>
    %77 = arith.mulf %61, %69 : vector<8x128xf32>
    %78 = arith.addf %76, %77 : vector<8x128xf32>
    %79 = math.tanh %78 : vector<8x128xf32>
    %80 = arith.mulf %75, %79 : vector<8x128xf32>
    %c1_37 = arith.constant 1 : index
    %c0_38 = arith.constant 0 : index
    %c0_39 = arith.constant 0 : index
    %81 = vector.load %arg8[%c1_37, %c0_38, %c0_39] : memref<4x8x128xf32, #tpu.memory_space<vmem>>, vector<1x8x128xf32>
    %82 = vector.shape_cast %81 : vector<1x8x128xf32> to vector<8x128xf32>
    %83 = vector.shape_cast %80 : vector<8x128xf32> to vector<1x8x128xf32>
    tpu.vector_store %arg8[%c1_37, %c0_38, %c0_39], %83 {strides = array<i32>} : memref<4x8x128xf32, #tpu.memory_space<vmem>>, vector<1x8x128xf32>,
    %c1_40 = arith.constant 1 : index
    %c0_41 = arith.constant 0 : index
    %c0_42 = arith.constant 0 : index
    %84 = vector.load %arg9[%c1_40, %c0_41, %c0_42] : memref<4x8x128xf32, #tpu.memory_space<vmem>>, vector<1x8x128xf32>
    %85 = vector.shape_cast %84 : vector<1x8x128xf32> to vector<8x128xf32>
    %86 = vector.shape_cast %78 : vector<8x128xf32> to vector<1x8x128xf32>
    tpu.vector_store %arg9[%c1_40, %c0_41, %c0_42], %86 {strides = array<i32>} : memref<4x8x128xf32, #tpu.memory_space<vmem>>, vector<1x8x128xf32>,
    %c2 = arith.constant 2 : index
    %c0_43 = arith.constant 0 : index
    %c0_44 = arith.constant 0 : index
    %87 = vector.load %arg1[%c2, %c0_43, %c0_44] : memref<4x8x128xf32, #tpu.memory_space<vmem>>, vector<1x8x128xf32>
    %88 = vector.shape_cast %87 : vector<1x8x128xf32> to vector<8x128xf32>
    %c2_45 = arith.constant 2 : index
    %c0_46 = arith.constant 0 : index
    %c0_47 = arith.constant 0 : index
    %89 = vector.load %arg2[%c2_45, %c0_46, %c0_47] : memref<4x8x128xf32, #tpu.memory_space<vmem>>, vector<1x8x128xf32>
    %90 = vector.shape_cast %89 : vector<1x8x128xf32> to vector<8x128xf32>
    %91 = tpu.concatenate %80, %88 in 1 : vector<8x128xf32>, vector<8x128xf32> -> vector<8x256xf32>
    %92 = arith.truncf %91 : vector<8x256xf32> to vector<8x256xbf16>
    %c2_48 = arith.constant 2 : index
    %c0_49 = arith.constant 0 : index
    %c0_50 = arith.constant 0 : index
    %93 = vector.load %arg3[%c2_48, %c0_49, %c0_50] : memref<4x256x512xbf16, #tpu.memory_space<vmem>>, vector<1x256x512xbf16>
    %94 = vector.shape_cast %93 : vector<1x256x512xbf16> to vector<256x512xbf16>
    %cst_51 = arith.constant dense<0.000000e+00> : vector<8x512xf32>
    %95 = tpu.matmul %92, %94, %cst_51 {dimension_numbers = #tpu.dot_dimension_numbers<[1], [0], [0], [1], [0, 0, 1, 1], [], []>} : vector<8x256xbf16>, vector<256x512xbf16>, vector<8x512xf32> -> vector<8x512xf32>
    %c2_52 = arith.constant 2 : index
    %c0_53 = arith.constant 0 : index
    %c0_54 = arith.constant 0 : index
    %96 = vector.load %arg4[%c2_52, %c0_53, %c0_54] : memref<4x8x512xf32, #tpu.memory_space<vmem>>, vector<1x8x512xf32>
    %97 = vector.shape_cast %96 : vector<1x8x512xf32> to vector<8x512xf32>
    %98 = arith.addf %95, %97 : vector<8x512xf32>
    %99 = vector.extract_strided_slice %98 {offsets = [0, 0], sizes = [8, 128], strides = [1, 1]} : vector<8x512xf32> to vector<8x128xf32>
    %100 = arith.negf %99 : vector<8x128xf32>
    %101 = math.exp %100 : vector<8x128xf32>
    %cst_55 = arith.constant 1.000000e+00 : f32
    %102 = vector.broadcast %cst_55 : f32 to vector<8x128xf32>
    %103 = arith.addf %102, %101 : vector<8x128xf32>
    %104 = arith.divf %102, %103 : vector<8x128xf32>
    %105 = vector.extract_strided_slice %98 {offsets = [0, 128], sizes = [8, 128], strides = [1, 1]} : vector<8x512xf32> to vector<8x128xf32>
    %106 = arith.negf %105 : vector<8x128xf32>
    %107 = math.exp %106 : vector<8x128xf32>
    %cst_56 = arith.constant 1.000000e+00 : f32
    %108 = vector.broadcast %cst_56 : f32 to vector<8x128xf32>
    %109 = arith.addf %108, %107 : vector<8x128xf32>
    %110 = arith.divf %108, %109 : vector<8x128xf32>
    %111 = vector.extract_strided_slice %98 {offsets = [0, 256], sizes = [8, 128], strides = [1, 1]} : vector<8x512xf32> to vector<8x128xf32>
    %112 = math.tanh %111 : vector<8x128xf32>
    %113 = vector.extract_strided_slice %98 {offsets = [0, 384], sizes = [8, 128], strides = [1, 1]} : vector<8x512xf32> to vector<8x128xf32>
    %114 = arith.negf %113 : vector<8x128xf32>
    %115 = math.exp %114 : vector<8x128xf32>
    %cst_57 = arith.constant 1.000000e+00 : f32
    %116 = vector.broadcast %cst_57 : f32 to vector<8x128xf32>
    %117 = arith.addf %116, %115 : vector<8x128xf32>
    %118 = arith.divf %116, %117 : vector<8x128xf32>
    %119 = arith.mulf %110, %90 : vector<8x128xf32>
    %120 = arith.mulf %104, %112 : vector<8x128xf32>
    %121 = arith.addf %119, %120 : vector<8x128xf32>
    %122 = math.tanh %121 : vector<8x128xf32>
    %123 = arith.mulf %118, %122 : vector<8x128xf32>
    %c2_58 = arith.constant 2 : index
    %c0_59 = arith.constant 0 : index
    %c0_60 = arith.constant 0 : index
    %124 = vector.load %arg8[%c2_58, %c0_59, %c0_60] : memref<4x8x128xf32, #tpu.memory_space<vmem>>, vector<1x8x128xf32>
    %125 = vector.shape_cast %124 : vector<1x8x128xf32> to vector<8x128xf32>
    %126 = vector.shape_cast %123 : vector<8x128xf32> to vector<1x8x128xf32>
    tpu.vector_store %arg8[%c2_58, %c0_59, %c0_60], %126 {strides = array<i32>} : memref<4x8x128xf32, #tpu.memory_space<vmem>>, vector<1x8x128xf32>,
    %c2_61 = arith.constant 2 : index
    %c0_62 = arith.constant 0 : index
    %c0_63 = arith.constant 0 : index
    %127 = vector.load %arg9[%c2_61, %c0_62, %c0_63] : memref<4x8x128xf32, #tpu.memory_space<vmem>>, vector<1x8x128xf32>
    %128 = vector.shape_cast %127 : vector<1x8x128xf32> to vector<8x128xf32>
    %129 = vector.shape_cast %121 : vector<8x128xf32> to vector<1x8x128xf32>
    tpu.vector_store %arg9[%c2_61, %c0_62, %c0_63], %129 {strides = array<i32>} : memref<4x8x128xf32, #tpu.memory_space<vmem>>, vector<1x8x128xf32>,
    %c3 = arith.constant 3 : index
    %c0_64 = arith.constant 0 : index
    %c0_65 = arith.constant 0 : index
    %130 = vector.load %arg1[%c3, %c0_64, %c0_65] : memref<4x8x128xf32, #tpu.memory_space<vmem>>, vector<1x8x128xf32>
    %131 = vector.shape_cast %130 : vector<1x8x128xf32> to vector<8x128xf32>
    %c3_66 = arith.constant 3 : index
    %c0_67 = arith.constant 0 : index
    %c0_68 = arith.constant 0 : index
    %132 = vector.load %arg2[%c3_66, %c0_67, %c0_68] : memref<4x8x128xf32, #tpu.memory_space<vmem>>, vector<1x8x128xf32>
    %133 = vector.shape_cast %132 : vector<1x8x128xf32> to vector<8x128xf32>
    %134 = tpu.concatenate %123, %131 in 1 : vector<8x128xf32>, vector<8x128xf32> -> vector<8x256xf32>
    %135 = arith.truncf %134 : vector<8x256xf32> to vector<8x256xbf16>
    %c3_69 = arith.constant 3 : index
    %c0_70 = arith.constant 0 : index
    %c0_71 = arith.constant 0 : index
    %136 = vector.load %arg3[%c3_69, %c0_70, %c0_71] : memref<4x256x512xbf16, #tpu.memory_space<vmem>>, vector<1x256x512xbf16>
    %137 = vector.shape_cast %136 : vector<1x256x512xbf16> to vector<256x512xbf16>
    %cst_72 = arith.constant dense<0.000000e+00> : vector<8x512xf32>
    %138 = tpu.matmul %135, %137, %cst_72 {dimension_numbers = #tpu.dot_dimension_numbers<[1], [0], [0], [1], [0, 0, 1, 1], [], []>} : vector<8x256xbf16>, vector<256x512xbf16>, vector<8x512xf32> -> vector<8x512xf32>
    %c3_73 = arith.constant 3 : index
    %c0_74 = arith.constant 0 : index
    %c0_75 = arith.constant 0 : index
    %139 = vector.load %arg4[%c3_73, %c0_74, %c0_75] : memref<4x8x512xf32, #tpu.memory_space<vmem>>, vector<1x8x512xf32>
    %140 = vector.shape_cast %139 : vector<1x8x512xf32> to vector<8x512xf32>
    %141 = arith.addf %138, %140 : vector<8x512xf32>
    %142 = vector.extract_strided_slice %141 {offsets = [0, 0], sizes = [8, 128], strides = [1, 1]} : vector<8x512xf32> to vector<8x128xf32>
    %143 = arith.negf %142 : vector<8x128xf32>
    %144 = math.exp %143 : vector<8x128xf32>
    %cst_76 = arith.constant 1.000000e+00 : f32
    %145 = vector.broadcast %cst_76 : f32 to vector<8x128xf32>
    %146 = arith.addf %145, %144 : vector<8x128xf32>
    %147 = arith.divf %145, %146 : vector<8x128xf32>
    %148 = vector.extract_strided_slice %141 {offsets = [0, 128], sizes = [8, 128], strides = [1, 1]} : vector<8x512xf32> to vector<8x128xf32>
    %149 = arith.negf %148 : vector<8x128xf32>
    %150 = math.exp %149 : vector<8x128xf32>
    %cst_77 = arith.constant 1.000000e+00 : f32
    %151 = vector.broadcast %cst_77 : f32 to vector<8x128xf32>
    %152 = arith.addf %151, %150 : vector<8x128xf32>
    %153 = arith.divf %151, %152 : vector<8x128xf32>
    %154 = vector.extract_strided_slice %141 {offsets = [0, 256], sizes = [8, 128], strides = [1, 1]} : vector<8x512xf32> to vector<8x128xf32>
    %155 = math.tanh %154 : vector<8x128xf32>
    %156 = vector.extract_strided_slice %141 {offsets = [0, 384], sizes = [8, 128], strides = [1, 1]} : vector<8x512xf32> to vector<8x128xf32>
    %157 = arith.negf %156 : vector<8x128xf32>
    %158 = math.exp %157 : vector<8x128xf32>
    %cst_78 = arith.constant 1.000000e+00 : f32
    %159 = vector.broadcast %cst_78 : f32 to vector<8x128xf32>
    %160 = arith.addf %159, %158 : vector<8x128xf32>
    %161 = arith.divf %159, %160 : vector<8x128xf32>
    %162 = arith.mulf %153, %133 : vector<8x128xf32>
    %163 = arith.mulf %147, %155 : vector<8x128xf32>
    %164 = arith.addf %162, %163 : vector<8x128xf32>
    %165 = math.tanh %164 : vector<8x128xf32>
    %166 = arith.mulf %161, %165 : vector<8x128xf32>
    %c3_79 = arith.constant 3 : index
    %c0_80 = arith.constant 0 : index
    %c0_81 = arith.constant 0 : index
    %167 = vector.load %arg8[%c3_79, %c0_80, %c0_81] : memref<4x8x128xf32, #tpu.memory_space<vmem>>, vector<1x8x128xf32>
    %168 = vector.shape_cast %167 : vector<1x8x128xf32> to vector<8x128xf32>
    %169 = vector.shape_cast %166 : vector<8x128xf32> to vector<1x8x128xf32>
    tpu.vector_store %arg8[%c3_79, %c0_80, %c0_81], %169 {strides = array<i32>} : memref<4x8x128xf32, #tpu.memory_space<vmem>>, vector<1x8x128xf32>,
    %c3_82 = arith.constant 3 : index
    %c0_83 = arith.constant 0 : index
    %c0_84 = arith.constant 0 : index
    %170 = vector.load %arg9[%c3_82, %c0_83, %c0_84] : memref<4x8x128xf32, #tpu.memory_space<vmem>>, vector<1x8x128xf32>
    %171 = vector.shape_cast %170 : vector<1x8x128xf32> to vector<8x128xf32>
    %172 = vector.shape_cast %164 : vector<8x128xf32> to vector<1x8x128xf32>
    tpu.vector_store %arg9[%c3_82, %c0_83, %c0_84], %172 {strides = array<i32>} : memref<4x8x128xf32, #tpu.memory_space<vmem>>, vector<1x8x128xf32>,
    %173 = arith.truncf %166 : vector<8x128xf32> to vector<8x128xbf16>
    %c0_85 = arith.constant 0 : index
    %c0_86 = arith.constant 0 : index
    %174 = vector.load %arg5[%c0_85, %c0_86] : memref<128x256xbf16, #tpu.memory_space<vmem>>, vector<128x256xbf16>
    %cst_87 = arith.constant dense<0.000000e+00> : vector<8x256xf32>
    %175 = tpu.matmul %173, %174, %cst_87 {dimension_numbers = #tpu.dot_dimension_numbers<[1], [0], [0], [1], [0, 0, 1, 1], [], []>} : vector<8x128xbf16>, vector<128x256xbf16>, vector<8x256xf32> -> vector<8x256xf32>
    %c0_88 = arith.constant 0 : index
    %c0_89 = arith.constant 0 : index
    %176 = vector.load %arg6[%c0_88, %c0_89] : memref<8x256xf32, #tpu.memory_space<vmem>>, vector<8x256xf32>
    %177 = arith.addf %175, %176 : vector<8x256xf32>
    %cst_90 = arith.constant dense<0xFF800000> : vector<8xf32>
    %178 = vector.multi_reduction <maximumf>, %177, %cst_90 [1] : vector<8x256xf32> to vector<8xf32>
    %179 = vector.shape_cast %178 : vector<8xf32> to vector<8x1xf32>
    %180 = vector.broadcast %179 : vector<8x1xf32> to vector<8x256xf32>
    %181 = arith.subf %177, %180 : vector<8x256xf32>
    %182 = math.exp %181 : vector<8x256xf32>
    %cst_91 = arith.constant dense<0.000000e+00> : vector<8xf32>
    %183 = vector.multi_reduction <add>, %182, %cst_91 [1] : vector<8x256xf32> to vector<8xf32>
    %184 = vector.shape_cast %183 : vector<8xf32> to vector<8x1xf32>
    %185 = math.log %184 : vector<8x1xf32>
    %186 = vector.broadcast %185 : vector<8x1xf32> to vector<8x256xf32>
    %187 = arith.subf %181, %186 : vector<8x256xf32>
    %c0_92 = arith.constant 0 : index
    %c0_93 = arith.constant 0 : index
    %188 = vector.load %arg7[%c0_92, %c0_93] : memref<8x256xf32, #tpu.memory_space<vmem>>, vector<8x256xf32>
    tpu.vector_store %arg7[%c0_92, %c0_93], %187 {strides = array<i32>} : memref<8x256xf32, #tpu.memory_space<vmem>>, vector<8x256xf32>,
    return
  }
}

</mosaic_0001>

<bundles_post_ra>
// kernel: decoder_forward_pallas.1
= control target key start
LH: loop header
LB: loop body
LE: loop exit
PB: predicated region body
PF: predicated region fallthrough
CT: control target
= control target key end

     0   :  { %15 = vsyncpa [#allocation3], 0  ;;  %s4467_s0 = inlined_call_operand.vmem [shape: f32[8,128], index: 0, kind: input, shape index: {}]   ;;  %s4468_s1 = inlined_call_operand.vmem [shape: f32[4,8,128], index: 1, kind: input, shape index: {}]   ;;  %s4469_s2 = inlined_call_operand.vmem [shape: f32[4,8,128], index: 2, kind: input, shape index: {}]   ;;  %s4470_s3 = inlined_call_operand.hbm [shape: bf16[4,256,512], index: 3, kind: input, shape index: {}]   ;;  %s4471_s4 = inlined_call_operand.hbm [shape: f32[4,8,512], index: 4, kind: input, shape index: {}]   ;;  %s4472_s5 = inlined_call_operand.hbm [shape: bf16[128,256], index: 5, kind: input, shape index: {}]   ;;  %s4473_s6 = inlined_call_operand.vmem [shape: f32[8,256], index: 6, kind: input, shape index: {}]   ;;  %s4474_s7 = inlined_call_operand.vmem [shape: f32[8,256], index: 7, kind: output, shape index: {0}]   ;;  %s4475_s8 = inlined_call_operand.hbm [shape: f32[4,8,128], index: 8, kind: output, shape index: {1}]   ;;  %s4476_s9 = inlined_call_operand.hbm [shape: f32[4,8,128], index: 9, kind: output, shape index: {2}]  }
   0x1   :  { %16 = vsyncpa [#allocation6], 0 }
   0x2   :  { %17 = vsyncpa [#allocation4], 0  ;;  %s42_s11 = sshll.u32 %s4471_s4, 4  ;;  %s43_s11 = int_to_ptr.hbm [resolvable:$true] %s42_s11 }
   0x3   :  { %18 = vsyncpa [#allocation10], 0  ;;  %s4113_s12 = smov [#allocation5]   ;;  %s29_s16 = sshll.u32 %s4470_s3, 4  ;;  %s30_s16 = int_to_ptr.hbm [resolvable:$true] %s29_s16 }
   0x4   :  { %s44_s13 = sshll.u32 %s4113_s12, 4  ;;  %s4114_s17 = smov 512   ;;  %s45_s13 = int_to_ptr.vmem [resolvable:$true] %s44_s13 }
   0x5   :  { %s4115_s18 = smov 32   ;;  %s4116_s19 = smov [#allocation2]  }
   0x6   :  { %50 = dma.hbm_to_vmem [thread:$0]  %s43_s11, 2048, %s45_s13, [#allocation6], %s4114_s17, %s4114_s17, %s4115_s18  }
   0x7   :  { %s31_s20 = sshll.u32 %s4116_s19, 4  ;;  %s4117_s21 = smov 256   ;;  %s32_s20 = int_to_ptr.vmem [resolvable:$true] %s31_s20 }
   0x8   :  { %s4118_s22 = smov 16   ;;  %s55_s24 = sshll.u32 %s4472_s5, 4  ;;  %s56_s24 = int_to_ptr.hbm [resolvable:$true] %s55_s24 }
   0x9   :  { %37 = dma.hbm_to_vmem [thread:$0]  %s30_s16, 32768, %s32_s20, [#allocation3], %s4117_s21, %s4117_s21, %s4118_s22  }
   0xa   :  { %s4119_s25 = smov [#allocation7]   ;;  %s4120_s27 = smov 128  }
   0xb   :  { %s57_s26 = sshll.u32 %s4119_s25, 4  ;;  %s4121_s3 = smov 8   ;;  %s58_s26 = int_to_ptr.vmem [resolvable:$true] %s57_s26 }
   0xc   :  { %63 = dma.hbm_to_vmem [thread:$0]  %s56_s24, 2048, %s58_s26, [#allocation6], %s4120_s27, %s4120_s27, %s4121_s3  }
   0xd   :  { %4105 = dma.done.wait [#allocation3], 32768  }
   0xe   :  { %4106 = vsyncadd [#allocation3], 4294934528 }
   0xf   :  { %4107 = dma.done.wait [#allocation6], 4096  }
  0x10   :  { %4108 = vsyncadd [#allocation6], 4294963200  ;;  %v2640_v0 = vld [vmem:[#allocation2 + $0xe0] sm:$0xf]  ;;  %v3662_v1 = vld [vmem:[#allocation2 + $0xec] sm:$0xf0] }
  0x11   :  { %v3660_v2 = vld [vmem:[#allocation2 + $0xe4] sm:$0xf]  ;;  %v2641_v3 = vor.u32 %v3662_v1, %v2640_v0  ;;  %v2642_v4 = vld [vmem:[#allocation2 + $0xf0] sm:$0xf0]  ;;  %v2768_v9 = vld [vmem:[#allocation2 + $0x1e0] sm:$0xf] }
  0x12   :  { %v3692_v5 = vld [vmem:[#allocation2 + $0x1e4] sm:$0xf]  ;;  %v2770_v6 = vld [vmem:[#allocation2 + $0x1f0] sm:$0xf0]  ;;  %v2645_v7 = vor.u32 %v3660_v2, %v2642_v4  ;;  %v3694_v10 = vld [vmem:[#allocation2 + $0x1ec] sm:$0xf0] }
  0x13   :  { %v2773_v8 = vor.u32 %v3692_v5, %v2770_v6  ;;  %v2624_v11 = vld [vmem:[#allocation2 + $0xc0] sm:$0xf]  ;;  %471 = vmatpush.bf16.msra.mxu0 %v2641_v3  ;;  %v2769_v12 = vor.u32 %v3694_v10, %v2768_v9  ;;  %v3658_v13 = vld [vmem:[#allocation2 + $0xcc] sm:$0xf0]  ;;  %v3656_v14 = vld [vmem:[#allocation2 + $0xc4] sm:$0xf] }
  0x14   :  { %v2626_v15 = vld [vmem:[#allocation2 + $0xd0] sm:$0xf0]  ;;  %497 = vmatpush.bf16.msra.mxu2 %v2645_v7  ;;  %v2625_v16 = vor.u32 %v3658_v13, %v2624_v11  ;;  %v3688_v18 = vld [vmem:[#allocation2 + $0x1c4] sm:$0xf]  ;;  %v2752_v20 = vld [vmem:[#allocation2 + $0x1c0] sm:$0xf] }
  0x15   :  { %510 = vmatpush.bf16.msra.mxu3 %v2773_v8  ;;  %v2629_v17 = vor.u32 %v3656_v14, %v2626_v15  ;;  %v2754_v19 = vld [vmem:[#allocation2 + $0x1d0] sm:$0xf0]  ;;  %484 = vmatpush.bf16.msra.mxu1 %v2769_v12  ;;  %v3690_v22 = vld [vmem:[#allocation2 + $0x1cc] sm:$0xf0]  ;;  %v2608_v23 = vld [vmem:[#allocation2 + $0xa0] sm:$0xf] }
  0x16   :  { %v2757_v21 = vor.u32 %v3688_v18, %v2754_v19  ;;  %v3654_v24 = vld [vmem:[#allocation2 + $0xac] sm:$0xf0]  ;;  %v2753_v25 = vor.u32 %v3690_v22, %v2752_v20  ;;  %v3652_v26 = vld [vmem:[#allocation2 + $0xa4] sm:$0xf]  ;;  %v2610_v27 = vld [vmem:[#allocation2 + $0xb0] sm:$0xf0] }
  0x17   :  { %v3684_v28 = vld [vmem:[#allocation2 + $0x1a4] sm:$0xf]  ;;  %472 = vmatpush.bf16.msra.mxu0 %v2625_v16  ;;  %v2609_v29 = vor.u32 %v3654_v24, %v2608_v23  ;;  %v2738_v30 = vld [vmem:[#allocation2 + $0x1b0] sm:$0xf0]  ;;  %v2736_v31 = vld [vmem:[#allocation2 + $0x1a0] sm:$0xf]  ;;  %v2613_v33 = vor.u32 %v3652_v26, %v2610_v27 }
  0x18   :  { %v3686_v32 = vld [vmem:[#allocation2 + $0x1ac] sm:$0xf0]  ;;  %498 = vmatpush.bf16.msra.mxu2 %v2629_v17  ;;  %v2741_v34 = vor.u32 %v3684_v28, %v2738_v30  ;;  %v2592_v35 = vld [vmem:[#allocation2 + $0x80] sm:$0xf]  ;;  %v3648_v37 = vld [vmem:[#allocation2 + $0x84] sm:$0xf] }
  0x19   :  { %511 = vmatpush.bf16.msra.mxu3 %v2757_v21  ;;  %v3650_v36 = vld [vmem:[#allocation2 + $0x8c] sm:$0xf0]  ;;  %485 = vmatpush.bf16.msra.mxu1 %v2753_v25  ;;  %v2737_v38 = vor.u32 %v3686_v32, %v2736_v31  ;;  %v2594_v39 = vld [vmem:[#allocation2 + $0x90] sm:$0xf0]  ;;  %v3680_v40 = vld [vmem:[#allocation2 + $0x184] sm:$0xf] }
  0x1a   :  { %v2722_v41 = vld [vmem:[#allocation2 + $0x190] sm:$0xf0]  ;;  %v2720_v42 = vld [vmem:[#allocation2 + $0x180] sm:$0xf]  ;;  %v3682_v43 = vld [vmem:[#allocation2 + $0x18c] sm:$0xf0]  ;;  %v2593_v44 = vor.u32 %v3650_v36, %v2592_v35  ;;  %v2597_v45 = vor.u32 %v3648_v37, %v2594_v39 }
  0x1b   :  { %473 = vmatpush.bf16.msra.mxu0 %v2609_v29  ;;  %v2725_v46 = vor.u32 %v3680_v40, %v2722_v41  ;;  %v2576_v47 = vld [vmem:[#allocation2 + $0x60] sm:$0xf]  ;;  %v3646_v48 = vld [vmem:[#allocation2 + $0x6c] sm:$0xf0]  ;;  %v3644_v49 = vld [vmem:[#allocation2 + $0x64] sm:$0xf]  ;;  %v2721_v50 = vor.u32 %v3682_v43, %v2720_v42 }
  0x1c   :  { %499 = vmatpush.bf16.msra.mxu2 %v2613_v33  ;;  %v2578_v51 = vld [vmem:[#allocation2 + $0x70] sm:$0xf0]  ;;  %v3676_v52 = vld [vmem:[#allocation2 + $0x164] sm:$0xf]  ;;  %v2704_v54 = vld [vmem:[#allocation2 + $0x160] sm:$0xf]  ;;  %v2577_v56 = vor.u32 %v3646_v48, %v2576_v47 }
  0x1d   :  { %512 = vmatpush.bf16.msra.mxu3 %v2741_v34  ;;  %486 = vmatpush.bf16.msra.mxu1 %v2737_v38  ;;  %v2706_v53 = vld [vmem:[#allocation2 + $0x170] sm:$0xf0]  ;;  %v3678_v55 = vld [vmem:[#allocation2 + $0x16c] sm:$0xf0]  ;;  %v2581_v57 = vor.u32 %v3644_v49, %v2578_v51  ;;  %v2560_v59 = vld [vmem:[#allocation2 + $0x40] sm:$0xf] }
  0x1e   :  { %v2709_v58 = vor.u32 %v3676_v52, %v2706_v53  ;;  %v3642_v60 = vld [vmem:[#allocation2 + $0x4c] sm:$0xf0]  ;;  %v3640_v61 = vld [vmem:[#allocation2 + $0x44] sm:$0xf]  ;;  %v2705_v62 = vor.u32 %v3678_v55, %v2704_v54  ;;  %v2562_v63 = vld [vmem:[#allocation2 + $0x50] sm:$0xf0] }
  0x1f   :  { %474 = vmatpush.bf16.msra.mxu0 %v2593_v44  ;;  %v3672_v0 = vld [vmem:[#allocation2 + $0x144] sm:$0xf]  ;;  %v2690_v1 = vld [vmem:[#allocation2 + $0x150] sm:$0xf0]  ;;  %v2688_v2 = vld [vmem:[#allocation2 + $0x140] sm:$0xf]  ;;  %v2561_v4 = vor.u32 %v3642_v60, %v2560_v59  ;;  %v2565_v5 = vor.u32 %v3640_v61, %v2562_v63 }
  0x20   :  { %500 = vmatpush.bf16.msra.mxu2 %v2597_v45  ;;  %v3674_v3 = vld [vmem:[#allocation2 + $0x14c] sm:$0xf0]  ;;  %v2693_v6 = vor.u32 %v3672_v0, %v2690_v1  ;;  %v2544_v7 = vld [vmem:[#allocation2 + $0x20] sm:$0xf]  ;;  %v3636_v9 = vld [vmem:[#allocation2 + $0x24] sm:$0xf] }
  0x21   :  { %513 = vmatpush.bf16.msra.mxu3 %v2725_v46  ;;  %487 = vmatpush.bf16.msra.mxu1 %v2721_v50  ;;  %v3638_v8 = vld [vmem:[#allocation2 + $0x2c] sm:$0xf0]  ;;  %v2689_v10 = vor.u32 %v3674_v3, %v2688_v2  ;;  %v2546_v11 = vld [vmem:[#allocation2 + $0x30] sm:$0xf0]  ;;  %v3668_v12 = vld [vmem:[#allocation2 + $0x124] sm:$0xf] }
  0x22   :  { %v2674_v13 = vld [vmem:[#allocation2 + $0x130] sm:$0xf0]  ;;  %v2672_v14 = vld [vmem:[#allocation2 + $0x120] sm:$0xf]  ;;  %v3670_v15 = vld [vmem:[#allocation2 + $0x12c] sm:$0xf0]  ;;  %v2545_v16 = vor.u32 %v3638_v8, %v2544_v7  ;;  %v2549_v19 = vor.u32 %v3636_v9, %v2546_v11 }
  0x23   :  { %475 = vmatpush.bf16.msra.mxu0 %v2577_v56  ;;  %v2528_v17 = vld [vmem:[#allocation2] sm:$0xf]  ;;  %v3634_v18 = vld [vmem:[#allocation2 + $0xc] sm:$0xf0]  ;;  %v2677_v20 = vor.u32 %v3668_v12, %v2674_v13  ;;  %v3632_v21 = vld [vmem:[#allocation2 + $0x4] sm:$0xf]  ;;  %v2673_v24 = vor.u32 %v3670_v15, %v2672_v14 }
  0x24   :  { %501 = vmatpush.bf16.msra.mxu2 %v2581_v57  ;;  %v2530_v22 = vld [vmem:[#allocation2 + $0x10] sm:$0xf0]  ;;  %v3664_v23 = vld [vmem:[#allocation2 + $0x104] sm:$0xf]  ;;  %v2648_v26 = vld [vmem:[#allocation2 + $0xe8] sm:$0xf]  ;;  %v2529_v31 = vor.u32 %v3634_v18, %v2528_v17 }
  0x25   :  { %514 = vmatpush.bf16.msra.mxu3 %v2709_v58  ;;  %488 = vmatpush.bf16.msra.mxu1 %v2705_v62  ;;  %v2658_v25 = vld [vmem:[#allocation2 + $0x110] sm:$0xf0]  ;;  %v3663_v27 = vld [vmem:[#allocation2 + $0xf4] sm:$0xf0]  ;;  %v3661_v28 = vld [vmem:[#allocation2 + $0xec] sm:$0xf]  ;;  %v2533_v35 = vor.u32 %v3632_v21, %v2530_v22 }
  0x26   :  { %v2650_v29 = vld [vmem:[#allocation2 + $0xf8] sm:$0xf0]  ;;  %v3693_v30 = vld [vmem:[#allocation2 + $0x1ec] sm:$0xf]  ;;  %v2656_v33 = vld [vmem:[#allocation2 + $0x100] sm:$0xf]  ;;  %v2661_v36 = vor.u32 %v3664_v23, %v2658_v25  ;;  %v2649_v40 = vor.u32 %v3663_v27, %v2648_v26 }
  0x27   :  { %476 = vmatpush.bf16.msra.mxu0 %v2561_v4  ;;  %v2778_v32 = vld [vmem:[#allocation2 + $0x1f8] sm:$0xf0]  ;;  %v3666_v34 = vld [vmem:[#allocation2 + $0x10c] sm:$0xf0]  ;;  %v78_v37 = vld [vmem:[%s4467_s0] sm:$0xff]  ;;  %v2653_v41 = vor.u32 %v3661_v28, %v2650_v29  ;;  %s4122_s24 = smov [#allocation8]  }
  0x28   :  { %502 = vmatpush.bf16.msra.mxu2 %v2565_v5  ;;  %v2776_v38 = vld [vmem:[#allocation2 + $0x1e8] sm:$0xf]  ;;  %v3695_v39 = vld [vmem:[#allocation2 + $0x1f4] sm:$0xf0]  ;;  %v79_v42 = vld [vmem:[%s4468_s1] sm:$0xff]  ;;  %v2781_v44 = vor.u32 %v3693_v30, %v2778_v32  ;;  %v2657_v45 = vor.u32 %v3666_v34, %v2656_v33  ;;  %v4192_v49 = vpack.c.bf16 %v78_v37, %v78_v37  ;;  %s2492_s5 = sshll.u32 %s4475_s8, 4  ;;  %s2493_s5 = int_to_ptr.hbm [resolvable:$true] %s2492_s5 }
  0x29   :  { %515 = vmatpush.bf16.msra.mxu3 %v2693_v6  ;;  %489 = vmatpush.bf16.msra.mxu1 %v2689_v10  ;;  %v2632_v43 = vld [vmem:[#allocation2 + $0xc8] sm:$0xf]  ;;  %v3659_v46 = vld [vmem:[#allocation2 + $0xd4] sm:$0xf0]  ;;  %v3657_v47 = vld [vmem:[#allocation2 + $0xcc] sm:$0xf]  ;;  %v2777_v50 = vor.u32 %v3695_v39, %v2776_v38  ;;  %v4194_v53 = vpack.c.bf16 %v79_v42, %v79_v42 }
  0x2a   :  { %v2634_v48 = vld [vmem:[#allocation2 + $0xd8] sm:$0xf0]  ;;  %v3689_v51 = vld [vmem:[#allocation2 + $0x1cc] sm:$0xf]  ;;  %v2760_v54 = vld [vmem:[#allocation2 + $0x1c8] sm:$0xf]  ;;  %v2633_v56 = vor.u32 %v3659_v46, %v2632_v43 }
  0x2b   :  { %477 = vmatpush.bf16.msra.mxu0 %v2545_v16  ;;  %v2762_v52 = vld [vmem:[#allocation2 + $0x1d8] sm:$0xf0]  ;;  %v3691_v55 = vld [vmem:[#allocation2 + $0x1d4] sm:$0xf0]  ;;  %v2637_v57 = vor.u32 %v3657_v47, %v2634_v48  ;;  %v2616_v58 = vld [vmem:[#allocation2 + $0xa8] sm:$0xf] }
  0x2c   :  { %503 = vmatpush.bf16.msra.mxu2 %v2549_v19  ;;  %v2765_v59 = vor.u32 %v3689_v51, %v2762_v52  ;;  %v3655_v60 = vld [vmem:[#allocation2 + $0xb4] sm:$0xf0]  ;;  %v3653_v61 = vld [vmem:[#allocation2 + $0xac] sm:$0xf]  ;;  %v2618_v62 = vld [vmem:[#allocation2 + $0xb8] sm:$0xf0]  ;;  %v2761_v63 = vor.u32 %v3691_v55, %v2760_v54 }
  0x2d   :  { %516 = vmatpush.bf16.msra.mxu3 %v2677_v20  ;;  %490 = vmatpush.bf16.msra.mxu1 %v2673_v24  ;;  %v3685_v0 = vld [vmem:[#allocation2 + $0x1ac] sm:$0xf]  ;;  %v2746_v1 = vld [vmem:[#allocation2 + $0x1b8] sm:$0xf0]  ;;  %v2744_v2 = vld [vmem:[#allocation2 + $0x1a8] sm:$0xf]  ;;  %v2617_v4 = vor.u32 %v3655_v60, %v2616_v58  ;;  %v2621_v5 = vor.u32 %v3653_v61, %v2618_v62 }
  0x2e   :  { %v3687_v3 = vld [vmem:[#allocation2 + $0x1b4] sm:$0xf0]  ;;  %v2600_v6 = vld [vmem:[#allocation2 + $0x88] sm:$0xf]  ;;  %v2749_v7 = vor.u32 %v3685_v0, %v2746_v1  ;;  %v3649_v9 = vld [vmem:[#allocation2 + $0x8c] sm:$0xf] }
  0x2f   :  { %478 = vmatpush.bf16.msra.mxu0 %v2529_v31  ;;  %v3651_v8 = vld [vmem:[#allocation2 + $0x94] sm:$0xf0]  ;;  %v2602_v10 = vld [vmem:[#allocation2 + $0x98] sm:$0xf0]  ;;  %v2745_v11 = vor.u32 %v3687_v3, %v2744_v2  ;;  %v3681_v12 = vld [vmem:[#allocation2 + $0x18c] sm:$0xf] }
  0x30   :  { %504 = vmatpush.bf16.msra.mxu2 %v2533_v35  ;;  %v2730_v13 = vld [vmem:[#allocation2 + $0x198] sm:$0xf0]  ;;  %v2728_v14 = vld [vmem:[#allocation2 + $0x188] sm:$0xf]  ;;  %v3683_v15 = vld [vmem:[#allocation2 + $0x194] sm:$0xf0]  ;;  %v2601_v16 = vor.u32 %v3651_v8, %v2600_v6  ;;  %v2605_v17 = vor.u32 %v3649_v9, %v2602_v10 }
  0x31   :  { %517 = vmatpush.bf16.msra.mxu3 %v2661_v36  ;;  %491 = vmatpush.bf16.msra.mxu1 %v2657_v45  ;;  %v2584_v18 = vld [vmem:[#allocation2 + $0x68] sm:$0xf]  ;;  %v2733_v19 = vor.u32 %v3681_v12, %v2730_v13  ;;  %v3647_v20 = vld [vmem:[#allocation2 + $0x74] sm:$0xf0]  ;;  %v3645_v21 = vld [vmem:[#allocation2 + $0x6c] sm:$0xf]  ;;  %v2729_v23 = vor.u32 %v3683_v15, %v2728_v14 }
  0x32   :  { %479 = vmatmul.bf16.vlgmr.msra.gmra.mxu0 %v4192_v49  ;;  %v2586_v22 = vld [vmem:[#allocation2 + $0x78] sm:$0xf0]  ;;  %v3677_v24 = vld [vmem:[#allocation2 + $0x16c] sm:$0xf]  ;;  %v2712_v26 = vld [vmem:[#allocation2 + $0x168] sm:$0xf]  ;;  %v2585_v28 = vor.u32 %v3647_v20, %v2584_v18 }
  0x33   :  { %523 = vmatpush.bf16.msrb.mxu0 %v2649_v40  ;;  %505 = vmatmul.bf16.vlgmr.msra.gmra.mxu2 %v4192_v49  ;;  %v2714_v25 = vld [vmem:[#allocation2 + $0x178] sm:$0xf0]  ;;  %v3679_v27 = vld [vmem:[#allocation2 + $0x174] sm:$0xf0]  ;;  %v2589_v29 = vor.u32 %v3645_v21, %v2586_v22  ;;  %v2568_v30 = vld [vmem:[#allocation2 + $0x48] sm:$0xf] }
  0x34   :  { %549 = vmatpush.bf16.msrb.mxu2 %v2653_v41  ;;  %518 = vmatmul.bf16.vlgmr.msra.gmra.mxu3 %v4194_v53  ;;  %v2717_v31 = vor.u32 %v3677_v24, %v2714_v25  ;;  %v3643_v32 = vld [vmem:[#allocation2 + $0x54] sm:$0xf0]  ;;  %v3641_v33 = vld [vmem:[#allocation2 + $0x4c] sm:$0xf]  ;;  %v2570_v34 = vld [vmem:[#allocation2 + $0x58] sm:$0xf0]  ;;  %v2713_v35 = vor.u32 %v3679_v27, %v2712_v26 }
  0x35   :  { %562 = vmatpush.bf16.msrb.mxu3 %v2781_v44  ;;  %536 = vmatpush.bf16.msrb.mxu1 %v2777_v50  ;;  %v3673_v36 = vld [vmem:[#allocation2 + $0x14c] sm:$0xf]  ;;  %v2698_v37 = vld [vmem:[#allocation2 + $0x158] sm:$0xf0]  ;;  %v2696_v38 = vld [vmem:[#allocation2 + $0x148] sm:$0xf]  ;;  %v2569_v40 = vor.u32 %v3643_v32, %v2568_v30  ;;  %v2573_v41 = vor.u32 %v3641_v33, %v2570_v34 }
  0x36   :  { %492 = vmatmul.bf16.vlgmr.msra.gmra.mxu1 %v4194_v53  ;;  %v3675_v39 = vld [vmem:[#allocation2 + $0x154] sm:$0xf0]  ;;  %v2552_v42 = vld [vmem:[#allocation2 + $0x28] sm:$0xf]  ;;  %v2701_v43 = vor.u32 %v3673_v36, %v2698_v37  ;;  %v3637_v45 = vld [vmem:[#allocation2 + $0x2c] sm:$0xf] }
  0x37   :  { %524 = vmatpush.bf16.msrb.mxu0 %v2633_v56  ;;  %v3639_v44 = vld [vmem:[#allocation2 + $0x34] sm:$0xf0]  ;;  %v2554_v46 = vld [vmem:[#allocation2 + $0x38] sm:$0xf0]  ;;  %v2697_v47 = vor.u32 %v3675_v39, %v2696_v38  ;;  %v3669_v48 = vld [vmem:[#allocation2 + $0x12c] sm:$0xf] }
  0x38   :  { %550 = vmatpush.bf16.msrb.mxu2 %v2637_v57  ;;  %v2682_v50 = vld [vmem:[#allocation2 + $0x138] sm:$0xf0]  ;;  %v2680_v51 = vld [vmem:[#allocation2 + $0x128] sm:$0xf]  ;;  %v3671_v52 = vld [vmem:[#allocation2 + $0x134] sm:$0xf0]  ;;  %v2553_v54 = vor.u32 %v3639_v44, %v2552_v42  ;;  %v2557_v55 = vor.u32 %v3637_v45, %v2554_v46 }
  0x39   :  { %563 = vmatpush.bf16.msrb.mxu3 %v2765_v59  ;;  %537 = vmatpush.bf16.msrb.mxu1 %v2761_v63  ;;  %v2536_v56 = vld [vmem:[#allocation2 + $0x8] sm:$0xf]  ;;  %v2685_v57 = vor.u32 %v3669_v48, %v2682_v50  ;;  %v3635_v58 = vld [vmem:[#allocation2 + $0x14] sm:$0xf0]  ;;  %v3633_v59 = vld [vmem:[#allocation2 + $0xc] sm:$0xf]  ;;  %v2681_v61 = vor.u32 %v3671_v52, %v2680_v51 }
  0x3a   :  { %v2538_v60 = vld [vmem:[#allocation2 + $0x18] sm:$0xf0]  ;;  %v3665_v62 = vld [vmem:[#allocation2 + $0x10c] sm:$0xf]  ;;  %v2664_v0 = vld [vmem:[#allocation2 + $0x108] sm:$0xf]  ;;  %v2537_v2 = vor.u32 %v3635_v58, %v2536_v56 }
  0x3b   :  { %525 = vmatpush.bf16.msrb.mxu0 %v2617_v4  ;;  %v2666_v63 = vld [vmem:[#allocation2 + $0x118] sm:$0xf0]  ;;  %v3667_v1 = vld [vmem:[#allocation2 + $0x114] sm:$0xf0]  ;;  %v2541_v3 = vor.u32 %v3633_v59, %v2538_v60  ;;  %v3756_v6 = vld [vmem:[#allocation2 + $0x3e4] sm:$0xf] }
  0x3c   :  { %551 = vmatpush.bf16.msrb.mxu2 %v2621_v5  ;;  %v2669_v4 = vor.u32 %v3665_v62, %v2666_v63  ;;  %v2665_v5 = vor.u32 %v3667_v1, %v2664_v0  ;;  %v3752_v9 = vld [vmem:[#allocation2 + $0x3c4] sm:$0xf]  ;;  %v3015_v10 = vld [vmem:[#allocation2 + $0x3d0] sm:$0xf0]  ;;  %v2901_v12 = vld [vmem:[#allocation2 + $0x2e0] sm:$0xf] }
  0x3d   :  { %564 = vmatpush.bf16.msrb.mxu3 %v2749_v7  ;;  %538 = vmatpush.bf16.msrb.mxu1 %v2745_v11  ;;  %v3031_v7 = vld [vmem:[#allocation2 + $0x3f0] sm:$0xf0]  ;;  %v3018_v11 = vor.u32 %v3752_v9, %v3015_v10  ;;  %v3726_v13 = vld [vmem:[#allocation2 + $0x2ec] sm:$0xf0]  ;;  %v3724_v14 = vld [vmem:[#allocation2 + $0x2e4] sm:$0xf] }
  0x3e   :  { %v3034_v8 = vor.u32 %v3756_v6, %v3031_v7  ;;  %v2902_v15 = vor.u32 %v3726_v13, %v2901_v12  ;;  %v3029_v18 = vld [vmem:[#allocation2 + $0x3e0] sm:$0xf]  ;;  %v3720_v26 = vld [vmem:[#allocation2 + $0x2c4] sm:$0xf]  ;;  %v2887_v27 = vld [vmem:[#allocation2 + $0x2d0] sm:$0xf0] }
  0x3f   :  { %526 = vmatpush.bf16.msrb.mxu0 %v2601_v16  ;;  %v2903_v16 = vld [vmem:[#allocation2 + $0x2f0] sm:$0xf0]  ;;  %v2885_v22 = vld [vmem:[#allocation2 + $0x2c0] sm:$0xf]  ;;  %v3754_v30 = vld [vmem:[#allocation2 + $0x3cc] sm:$0xf0] }
  0x40   :  { %552 = vmatpush.bf16.msrb.mxu2 %v2605_v17  ;;  %v2906_v17 = vor.u32 %v3724_v14, %v2903_v16  ;;  %v147_v24 = vld [vmem:[#allocation5] sm:$0xff]  ;;  %v2983_v34 = vld [vmem:[#allocation2 + $0x390] sm:$0xf0]  ;;  %v3718_v38 = vld [vmem:[#allocation2 + $0x2ac] sm:$0xf0]  ;;  %s4123_s28 = smov [#allocation9]  }
  0x41   :  { %565 = vmatpush.bf16.msrb.mxu3 %v2733_v19  ;;  %539 = vmatpush.bf16.msrb.mxu1 %v2729_v23  ;;  %v3748_v19 = vld [vmem:[#allocation2 + $0x3a4] sm:$0xf]  ;;  %v3722_v23 = vld [vmem:[#allocation2 + $0x2cc] sm:$0xf0]  ;;  %v2869_v37 = vld [vmem:[#allocation2 + $0x2a0] sm:$0xf] }
  0x42   :  { %v2886_v25 = vor.u32 %v3722_v23, %v2885_v22  ;;  %v3716_v39 = vld [vmem:[#allocation2 + $0x2a4] sm:$0xf]  ;;  %v2871_v42 = vld [vmem:[#allocation2 + $0x2b0] sm:$0xf0]  ;;  %v2997_v46 = vld [vmem:[#allocation2 + $0x3a0] sm:$0xf] }
  0x43   :  { %527 = vmatpush.bf16.msrb.mxu0 %v2585_v28  ;;  %v2890_v28 = vor.u32 %v3720_v26, %v2887_v27  ;;  %v2874_v45 = vor.u32 %v3716_v39, %v2871_v42  ;;  %v3740_v50 = vld [vmem:[#allocation2 + $0x364] sm:$0xf]  ;;  %v2967_v51 = vld [vmem:[#allocation2 + $0x370] sm:$0xf0]  ;;  %v2853_v56 = vld [vmem:[#allocation2 + $0x280] sm:$0xf] }
  0x44   :  { %553 = vmatpush.bf16.msrb.mxu2 %v2589_v29  ;;  %v3013_v29 = vld [vmem:[#allocation2 + $0x3c0] sm:$0xf]  ;;  %v2855_v62 = vld [vmem:[#allocation2 + $0x290] sm:$0xf0]  ;;  %v3746_v1 = vld [vmem:[#allocation2 + $0x38c] sm:$0xf0] }
  0x45   :  { %566 = vmatpush.bf16.msrb.mxu3 %v2717_v31  ;;  %540 = vmatpush.bf16.msrb.mxu1 %v2713_v35  ;;  %v3744_v31 = vld [vmem:[#allocation2 + $0x384] sm:$0xf]  ;;  %v3014_v33 = vor.u32 %v3754_v30, %v3013_v29  ;;  %v2981_v0 = vld [vmem:[#allocation2 + $0x380] sm:$0xf]  ;;  %v2951_v6 = vld [vmem:[#allocation2 + $0x350] sm:$0xf0] }
  0x46   :  { %v2986_v36 = vor.u32 %v3744_v31, %v2983_v34  ;;  %v3710_v9 = vld [vmem:[#allocation2 + $0x26c] sm:$0xf0]  ;;  %v3708_v10 = vld [vmem:[#allocation2 + $0x264] sm:$0xf]  ;;  %v2839_v14 = vld [vmem:[#allocation2 + $0x270] sm:$0xf0] }
  0x47   :  { %528 = vmatpush.bf16.msrb.mxu0 %v2569_v40  ;;  %v2965_v16 = vld [vmem:[#allocation2 + $0x360] sm:$0xf]  ;;  %v3706_v23 = vld [vmem:[#allocation2 + $0x24c] sm:$0xf0]  ;;  %v3700_v42 = vld [vmem:[#allocation2 + $0x224] sm:$0xf] }
  0x48   :  { %554 = vmatpush.bf16.msrb.mxu2 %v2573_v41  ;;  %v2870_v41 = vor.u32 %v3718_v38, %v2869_v37  ;;  %v2821_v22 = vld [vmem:[#allocation2 + $0x240] sm:$0xf]  ;;  %v3738_v31 = vld [vmem:[#allocation2 + $0x34c] sm:$0xf0]  ;;  %v3039_v37 = vld [vmem:[#allocation2 + $0x3f8] sm:$0xf0] }
  0x49   :  { %567 = vmatpush.bf16.msrb.mxu3 %v2701_v43  ;;  %541 = vmatpush.bf16.msrb.mxu1 %v2697_v47  ;;  %v148_v43 = vld [vmem:[#allocation5 + $0x8] sm:$0xff]  ;;  %v3750_v47 = vld [vmem:[#allocation2 + $0x3ac] sm:$0xf0]  ;;  %v2822_v27 = vor.u32 %v3706_v23, %v2821_v22  ;;  %v2949_v30 = vld [vmem:[#allocation2 + $0x340] sm:$0xf]  ;;  %s2503_s29 = sshll.u32 %s4123_s28, 4  ;;  %s2504_s29 = int_to_ptr.vmem [resolvable:$true] %s2503_s29 }
  0x4a   :  { %v2998_v48 = vor.u32 %v3750_v47, %v2997_v46  ;;  %v2950_v34 = vor.u32 %v3738_v31, %v2949_v30  ;;  %v2805_v38 = vld [vmem:[#allocation2 + $0x220] sm:$0xf]  ;;  %v2807_v46 = vld [vmem:[#allocation2 + $0x230] sm:$0xf0]  ;;  %v2893_v22 = vld [vmem:[#allocation2 + $0x2c8] sm:$0xf] }
  0x4b   :  { %529 = vmatpush.bf16.msrb.mxu0 %v2553_v54  ;;  %v2933_v47 = vld [vmem:[#allocation2 + $0x320] sm:$0xf]  ;;  %v3723_v23 = vld [vmem:[#allocation2 + $0x2d4] sm:$0xf0]  ;;  %v3021_v30 = vld [vmem:[#allocation2 + $0x3c8] sm:$0xf] }
  0x4c   :  { %555 = vmatpush.bf16.msrb.mxu2 %v2557_v55  ;;  %v2970_v55 = vor.u32 %v3740_v50, %v2967_v51  ;;  %v3734_v50 = vld [vmem:[#allocation2 + $0x32c] sm:$0xf0]  ;;  %v3753_v51 = vld [vmem:[#allocation2 + $0x3cc] sm:$0xf]  ;;  %s2505_s10 = sshll.u32 %s4476_s9, 4  ;;  %s2506_s10 = int_to_ptr.hbm [resolvable:$true] %s2505_s10 }
  0x4d   :  { %568 = vmatpush.bf16.msrb.mxu3 %v2685_v57  ;;  %542 = vmatpush.bf16.msrb.mxu1 %v2681_v61  ;;  %v3714_v57 = vld [vmem:[#allocation2 + $0x28c] sm:$0xf0]  ;;  %v3712_v61 = vld [vmem:[#allocation2 + $0x284] sm:$0xf] }
  0x4e   :  { %v2854_v60 = vor.u32 %v3714_v57, %v2853_v56  ;;  %v2858_v63 = vor.u32 %v3712_v61, %v2855_v62  ;;  %v2934_v57 = vor.u32 %v3734_v50, %v2933_v47  ;;  %v2791_v61 = vld [vmem:[#allocation2 + $0x210] sm:$0xf0]  ;;  %v3717_v50 = vld [vmem:[#allocation2 + $0x2ac] sm:$0xf] }
  0x4f   :  { %530 = vmatpush.bf16.msrb.mxu0 %v2537_v2  ;;  %v3736_v2 = vld [vmem:[#allocation2 + $0x344] sm:$0xf] }
  0x50   :  { %556 = vmatpush.bf16.msrb.mxu2 %v2541_v3  ;;  %v2954_v7 = vor.u32 %v3736_v2, %v2951_v6  ;;  %v149_v2 = vld [vmem:[#allocation5 + $0x10] sm:$0xff] }
  0x51   :  { %569 = vmatpush.bf16.msrb.mxu3 %v2669_v4  ;;  %543 = vmatpush.bf16.msrb.mxu1 %v2665_v5  ;;  %v2982_v5 = vor.u32 %v3746_v1, %v2981_v0  ;;  %v2909_v0 = vld [vmem:[#allocation2 + $0x2e8] sm:$0xf]  ;;  %v3727_v1 = vld [vmem:[#allocation2 + $0x2f4] sm:$0xf0] }
  0x52   :  { %531 = vmatmul.bf16.vlgmr.msrb.gmra.mxu0 %v4192_v49  ;;  %v2910_v6 = vor.u32 %v3727_v1, %v2909_v0  ;;  %v2861_v0 = vld [vmem:[#allocation2 + $0x288] sm:$0xf]  ;;  %v3715_v1 = vld [vmem:[#allocation2 + $0x294] sm:$0xf0] }
  0x53   :  { %557 = vmatmul.bf16.vlgmr.msrb.gmra.mxu2 %v4192_v49  ;;  %v3758_v49 = vld [vmem:[#allocation2 + $0x3ec] sm:$0xf0]  ;;  %1036 = vmatpush.bf16.msra.mxu0 %v2902_v15  ;;  %v2842_v15 = vor.u32 %v3708_v10, %v2839_v14 }
  0x54   :  { %570 = vmatmul.bf16.vlgmr.msrb.gmra.mxu3 %v4194_v53  ;;  %544 = vmatmul.bf16.vlgmr.msrb.gmra.mxu1 %v4194_v53  ;;  %v3030_v20 = vor.u32 %v3758_v49, %v3029_v18  ;;  %v2999_v53 = vld [vmem:[#allocation2 + $0x3b0] sm:$0xf0]  ;;  %v3732_v18 = vld [vmem:[#allocation2 + $0x324] sm:$0xf]  ;;  %v3730_v14 = vld [vmem:[#allocation2 + $0x30c] sm:$0xf0] }
  0x55   :  { %1075 = vmatpush.bf16.msra.mxu3 %v3034_v8  ;;  %1062 = vmatpush.bf16.msra.mxu2 %v2906_v17  ;;  %v3002_v21 = vor.u32 %v3748_v19, %v2999_v53  ;;  %v2837_v8 = vld [vmem:[#allocation2 + $0x260] sm:$0xf]  ;;  %v3742_v17 = vld [vmem:[#allocation2 + $0x36c] sm:$0xf0]  ;;  %v2935_v19 = vld [vmem:[#allocation2 + $0x330] sm:$0xf0] }
  0x56   :  { %1049 = vmatpush.bf16.msra.mxu1 %v3030_v20  ;;  %v2838_v13 = vor.u32 %v3710_v9, %v2837_v8  ;;  %v2966_v49 = vor.u32 %v3742_v17, %v2965_v16  ;;  %v2911_v8 = vld [vmem:[#allocation2 + $0x2f8] sm:$0xf0]  ;;  %v3037_v17 = vld [vmem:[#allocation2 + $0x3e8] sm:$0xf] }
  0x57   :  { %1037 = vmatpush.bf16.msra.mxu0 %v2886_v25 }
  0x59   :  { %1076 = vmatpush.bf16.msra.mxu3 %v3018_v11  ;;  %1063 = vmatpush.bf16.msra.mxu2 %v2890_v28  ;;  %v2823_v28 = vld [vmem:[#allocation2 + $0x250] sm:$0xf0] }
  0x5a   :  { %1050 = vmatpush.bf16.msra.mxu1 %v3014_v33  ;;  %v2919_v33 = vld [vmem:[#allocation2 + $0x310] sm:$0xf0] }
  0x5b   :  { %1038 = vmatpush.bf16.msra.mxu0 %v2870_v41  ;;  %v3702_v41 = vld [vmem:[#allocation2 + $0x22c] sm:$0xf0] }
  0x5d   :  { %1077 = vmatpush.bf16.msra.mxu3 %v3002_v21  ;;  %1064 = vmatpush.bf16.msra.mxu2 %v2874_v45  ;;  %v2938_v21 = vor.u32 %v3732_v18, %v2935_v19  ;;  %v2806_v45 = vor.u32 %v3702_v41, %v2805_v38  ;;  %v3759_v18 = vld [vmem:[#allocation2 + $0x3f4] sm:$0xf0] }
  0x5e   :  { %1051 = vmatpush.bf16.msra.mxu1 %v2998_v48  ;;  %v2810_v48 = vor.u32 %v3700_v42, %v2807_v46  ;;  %v150_v41 = vld [vmem:[#allocation5 + $0x18] sm:$0xff] }
  0x5f   :  { %1039 = vmatpush.bf16.msra.mxu0 %v2854_v60  ;;  %v3696_v60 = vld [vmem:[#allocation2 + $0x204] sm:$0xf] }
  0x61   :  { %1078 = vmatpush.bf16.msra.mxu3 %v2986_v36  ;;  %1065 = vmatpush.bf16.msra.mxu2 %v2858_v63  ;;  %v3757_v36 = vld [vmem:[#allocation2 + $0x3ec] sm:$0xf] }
  0x62   :  { %1052 = vmatpush.bf16.msra.mxu1 %v2982_v5  ;;  %v2794_v5 = vor.u32 %v3696_v60, %v2791_v61 }
  0x63   :  { %1040 = vmatpush.bf16.msra.mxu0 %v2838_v13  ;;  %v2917_v13 = vld [vmem:[#allocation2 + $0x300] sm:$0xf] }
  0x64   :  { %v2918_v16 = vor.u32 %v3730_v14, %v2917_v13  ;;  %v3747_v14 = vld [vmem:[#allocation2 + $0x394] sm:$0xf0] }
  0x65   :  { %1079 = vmatpush.bf16.msra.mxu3 %v2970_v55  ;;  %1066 = vmatpush.bf16.msra.mxu2 %v2842_v15  ;;  %v2789_v55 = vld [vmem:[#allocation2 + $0x200] sm:$0xf]  ;;  %v2973_v15 = vld [vmem:[#allocation2 + $0x368] sm:$0xf] }
  0x66   :  { %1053 = vmatpush.bf16.msra.mxu1 %v2966_v49  ;;  %v3749_v49 = vld [vmem:[#allocation2 + $0x3ac] sm:$0xf] }
  0x67   :  { %1041 = vmatpush.bf16.msra.mxu0 %v2822_v27  ;;  %v2894_v27 = vor.u32 %v3723_v23, %v2893_v22  ;;  %v2845_v23 = vld [vmem:[#allocation2 + $0x268] sm:$0xf] }
  0x69   :  { %1080 = vmatpush.bf16.msra.mxu3 %v2954_v7  ;;  %v3725_v7 = vld [vmem:[#allocation2 + $0x2ec] sm:$0xf] }
  0x6a   :  { %1054 = vmatpush.bf16.msra.mxu1 %v2950_v34  ;;  %v2943_v34 = vld [vmem:[#allocation2 + $0x338] sm:$0xf0] }
  0x6b   :  { %1042 = vmatpush.bf16.msra.mxu0 %v2806_v45  ;;  %v2785_v45 = vld [vmem:[%s4468_s1 + $0x8] sm:$0xff] }
  0x6c   :  { %v4256_v60 = vpack.c.bf16 %v2785_v45, %v2785_v45 }
  0x6d   :  { %1081 = vmatpush.bf16.msra.mxu3 %v2938_v21  ;;  %v3007_v21 = vld [vmem:[#allocation2 + $0x3b8] sm:$0xf0] }
  0x6e   :  { %1055 = vmatpush.bf16.msra.mxu1 %v2934_v57  ;;  %v3005_v57 = vld [vmem:[#allocation2 + $0x3a8] sm:$0xf] }
  0x72   :  { %1056 = vmatpush.bf16.msra.mxu1 %v2918_v16  ;;  %v3737_v16 = vld [vmem:[#allocation2 + $0x34c] sm:$0xf] }
  0x75   :  { %1057 = vmatmul.bf16.vlgmr.msra.gmra.mxu1 %v4256_v60 }
  0xaf   :  { %v480_v32 = vpop.f32.mrf.mxu0 }
  0xb0   :  { %v481_v35 = vadd.f32 %v480_v32, %v147_v24  ;;  %v3704_v24 = vld [vmem:[#allocation2 + $0x244] sm:$0xf] }
  0xb1   :  { %v2826_v29 = vor.u32 %v3704_v24, %v2823_v28  ;;  %v3728_v32 = vld [vmem:[#allocation2 + $0x304] sm:$0xf]  ;;  %v3721_v28 = vld [vmem:[#allocation2 + $0x2cc] sm:$0xf] }
  0xb3   :  { %v493_v40 = vpop.f32.mrf.mxu1  ;;  %1067 = vmatpush.bf16.msra.mxu2 %v2826_v29  ;;  %v2895_v29 = vld [vmem:[#allocation2 + $0x2d8] sm:$0xf0] }
  0xb4   :  { %v494_v44 = vadd.f32 %v493_v40, %v481_v35  ;;  %v2922_v35 = vor.u32 %v3728_v32, %v2919_v33  ;;  %v3042_v40 = vor.u32 %v3757_v36, %v3039_v37  ;;  %v3755_v36 = vld [vmem:[#allocation2 + $0x3d4] sm:$0xf0]  ;;  %v3745_v37 = vld [vmem:[#allocation2 + $0x38c] sm:$0xf] }
  0xb5   :  { %v3022_v42 = vor.u32 %v3755_v36, %v3021_v30  ;;  %v2829_v36 = vld [vmem:[#allocation2 + $0x248] sm:$0xf] }
  0xb6   :  { %v506_v52 = vpop.f32.mrf.mxu2  ;;  %v2782_v54 = vmul.f32 -1.442695, %v494_v44  ;;  %1082 = vmatpush.bf16.msra.mxu3 %v2922_v35  ;;  %v2898_v35 = vor.u32 %v3721_v28, %v2895_v29  ;;  %v2847_v29 = vld [vmem:[#allocation2 + $0x278] sm:$0xf0] }
  0xb7   :  { %v507_v58 = vadd.f32 %v506_v52, %v148_v43  ;;  %v519_v59 = vpop.f32.mrf.mxu3  ;;  %v482_v4 = vpop.f32.mrf.mxu0  ;;  %v3023_v52 = vld [vmem:[#allocation2 + $0x3d8] sm:$0xf0]  ;;  %1068 = vmatpush.bf16.msra.mxu2 %v2810_v48  ;;  %v3719_v48 = vld [vmem:[#allocation2 + $0x2b4] sm:$0xf0] }
  0xb8   :  { %3915 = vpow2.f32 %v2782_v54 }
  0xb9   :  { %v520_v3 = vadd.f32 %v519_v59, %v507_v58  ;;  %v3026_v58 = vor.u32 %v3753_v51, %v3023_v52  ;;  %v3698_v59 = vld [vmem:[#allocation2 + $0x20c] sm:$0xf0]  ;;  %v2879_v51 = vld [vmem:[#allocation2 + $0x2b8] sm:$0xf0]  ;;  %1083 = vmatmul.bf16.vlgmr.msra.gmra.mxu3 %v4256_v60 }
  0xba   :  { %1127 = vmatpush.bf16.msrb.mxu3 %v3042_v40  ;;  %v2790_v4 = vor.u32 %v3698_v59, %v2789_v55  ;;  %v2882_v55 = vor.u32 %v3717_v50, %v2879_v51  ;;  %v3741_v59 = vld [vmem:[#allocation2 + $0x36c] sm:$0xf]  ;;  %v2927_v50 = vld [vmem:[#allocation2 + $0x318] sm:$0xf0]  ;;  %v2813_v51 = vld [vmem:[#allocation2 + $0x228] sm:$0xf] }
  0xbb   :  { %v2783_v11 = vmul.f32 -1.442695, %v520_v3  ;;  %v495_v12 = vpop.f32.mrf.mxu1  ;;  %1069 = vmatpush.bf16.msra.mxu2 %v2794_v5 }
  0xbc   :  { %v2914_v12 = vor.u32 %v3725_v7, %v2911_v8  ;;  %1043 = vmatpush.bf16.msra.mxu0 %v2790_v4  ;;  %v2863_v7 = vld [vmem:[#allocation2 + $0x298] sm:$0xf0]  ;;  %v2989_v8 = vld [vmem:[#allocation2 + $0x388] sm:$0xf] }
  0xbd   :  { %3917 = vpow2.f32 %v2783_v11 }
  0xbe   :  { %v3916_v20 = vpop.eup %3915  ;;  %v508_v53 = vpop.f32.mrf.mxu2  ;;  %1128 = vmatpush.bf16.msrb.mxu3 %v3026_v58  ;;  %v3751_v58 = vld [vmem:[#allocation2 + $0x3b4] sm:$0xf0] }
  0xbf   :  { %v4204_v25 = vadd.f32 1.0, %v3916_v20  ;;  %v521_v26 = vpop.f32.mrf.mxu3  ;;  %1114 = vmatpush.bf16.msrb.mxu2 %v2914_v12  ;;  %v3038_v53 = vor.u32 %v3759_v18, %v3037_v17  ;;  %v3006_v61 = vor.u32 %v3751_v58, %v3005_v57  ;;  %v2862_v12 = vor.u32 %v3715_v1, %v2861_v0  ;;  %v2959_v17 = vld [vmem:[#allocation2 + $0x358] sm:$0xf0]  ;;  %v80_v18 = vld [vmem:[%s4469_s2] sm:$0xff] }
  0xc0   :  { %1088 = vmatpush.bf16.msrb.mxu0 %v2910_v6  ;;  %v3010_v26 = vor.u32 %v3749_v49, %v3007_v21  ;;  %v3713_v6 = vld [vmem:[#allocation2 + $0x28c] sm:$0xf]  ;;  %v2990_v21 = vor.u32 %v3747_v14, %v2989_v8  ;;  %v2962_v22 = vor.u32 %v3737_v16, %v2959_v17  ;;  %v2815_v57 = vld [vmem:[#allocation2 + $0x238] sm:$0xf0]  ;;  %v2925_v8 = vld [vmem:[#allocation2 + $0x308] sm:$0xf] }
  0xc1   :  { %3919 = vrcp.f32 %v4204_v25  ;;  %v590_v44 = vand.u32 2147483648, %v4204_v25  ;;  %v588_v54 = vand.u32 2147483647, %v4204_v25  ;;  %vm584_vm0 = vweird.f32 %v4204_v25  ;;  %1101 = vmatpush.bf16.msrb.mxu1 %v3038_v53 }
  0xc2   :  { %1129 = vmatpush.bf16.msrb.mxu3 %v3010_v26  ;;  %v2866_v13 = vor.u32 %v3713_v6, %v2863_v7  ;;  %v2799_v6 = vld [vmem:[#allocation2 + $0x218] sm:$0xf0] }
  0xc3   :  { %v3918_v39 = vpop.eup %3917  ;;  %v4218_v63 = vor.u32 1.1754944e-38, %v590_v44  ;;  %vm4231_vm4 = vcmp.eq.f32.partialorder %v588_v54, 8.507059e+37  ;;  %v2877_v44 = vld [vmem:[#allocation2 + $0x2a8] sm:$0xf]  ;;  %1115 = vmatpush.bf16.msrb.mxu2 %v2898_v35 }
  0xc4   :  { %v4207_v43 = vadd.f32 1.0, %v3918_v39  ;;  %1089 = vmatpush.bf16.msrb.mxu0 %v2894_v27  ;;  %v2878_v54 = vor.u32 %v3719_v48, %v2877_v44  ;;  %v3739_v44 = vld [vmem:[#allocation2 + $0x354] sm:$0xf0]  ;;  %v3729_v48 = vld [vmem:[#allocation2 + $0x30c] sm:$0xf] }
  0xc5   :  { %1102 = vmatpush.bf16.msrb.mxu1 %v3022_v42  ;;  %v2831_v42 = vld [vmem:[#allocation2 + $0x258] sm:$0xf0]  ;;  %v2930_v58 = vor.u32 %v3729_v48, %v2927_v50  ;;  %v3274_v50 = vld [vmem:[#allocation2 + $0x5c0] sm:$0xf] }
  0xc6   :  { %3921 = vrcp.f32 %v4207_v43  ;;  %v607_v3 = vand.u32 2147483647, %v4207_v43  ;;  %v609_v9 = vand.u32 2147483648, %v4207_v43  ;;  %vm603_vm3 = vweird.f32 %v4207_v43 }
  0xc7   :  { %v4212_v56 = vpop.eup %3919  ;;  %1116 = vmatpush.bf16.msrb.mxu2 %v2882_v55 }
  0xc8   :  { %v580_v62 = vmul.f32 %v4212_v56, %v4204_v25  ;;  %vm585_vm1 = vweird.f32 %v4212_v56  ;;  %v610_v32 = vor.u32 1.1754944e-38, %v609_v9  ;;  %vm4247_vm7 = vcmp.eq.f32.partialorder %v607_v3, 8.507059e+37  ;;  %1090 = vmatpush.bf16.msrb.mxu0 %v2878_v54  ;;  %v3701_v54 = vld [vmem:[#allocation2 + $0x22c] sm:$0xf] }
  0xc9   :  { %vm4226_vm2 = vmor %vm584_vm0, %vm585_vm1  ;;  %1103 = vmatpush.bf16.msrb.mxu1 %v3006_v61  ;;  %v3735_v61 = vld [vmem:[#allocation2 + $0x334] sm:$0xf0]  ;;  %v2818_v1 = vor.u32 %v3701_v54, %v2815_v57  ;;  %v3244_v57 = vld [vmem:[#allocation2 + $0x590] sm:$0xf0] }
  0xca   :  { %v581_v10 = vsub.f32 1.0, %v580_v62  ;;  %v2975_v62 = vld [vmem:[#allocation2 + $0x378] sm:$0xf0] }
  0xcb   :  { %v2978_v5 = vor.u32 %v3741_v59, %v2975_v62  ;;  %1117 = vmatpush.bf16.msrb.mxu2 %v2866_v13  ;;  %v2941_v59 = vld [vmem:[#allocation2 + $0x328] sm:$0xf] }
  0xcc   :  { %v4235_v19 = vpop.eup %3921  ;;  %v582_v20 = vmul.f32 %v4212_v56, %v581_v10  ;;  %1091 = vmatpush.bf16.msrb.mxu0 %v2862_v12  ;;  %v2942_v7 = vor.u32 %v3735_v61, %v2941_v59  ;;  %v3130_v61 = vld [vmem:[#allocation2 + $0x4a0] sm:$0xf] }
  0xcd   :  { %v599_v24 = vmul.f32 %v4235_v19, %v4207_v43  ;;  %vm604_vm5 = vweird.f32 %v4235_v19  ;;  %v2991_v43 = vld [vmem:[#allocation2 + $0x398] sm:$0xf0]  ;;  %1104 = vmatpush.bf16.msrb.mxu1 %v2990_v21 }
  0xce   :  { %vm4243_vm6 = vmor %vm603_vm3, %vm604_vm5  ;;  %v583_v40 = vadd.f32 %v4212_v56, %v582_v20  ;;  %v2994_v47 = vor.u32 %v3745_v37, %v2991_v43  ;;  %v3707_v37 = vld [vmem:[#allocation2 + $0x254] sm:$0xf0]  ;;  %v2957_v43 = vld [vmem:[#allocation2 + $0x348] sm:$0xf] }
  0xcf   :  { %v532_v25 = vpop.f32.mrf.mxu0  ;;  %v600_v38 = vsub.f32 1.0, %v599_v24  ;;  %v3711_v24 = vld [vmem:[#allocation2 + $0x274] sm:$0xf0]  ;;  %v2958_v55 = vor.u32 %v3739_v44, %v2957_v43  ;;  %v3146_v43 = vld [vmem:[#allocation2 + $0x4c0] sm:$0xf] }
  0xd0   :  { %v533_v33 = vadd.f32 %v532_v25, %v149_v2  ;;  %v587_v2 = vsel %vm4226_vm2, %v4212_v56, %v583_v40  ;;  %1130 = vmatpush.bf16.msrb.mxu3 %v2994_v47  ;;  %v3709_v25 = vld [vmem:[#allocation2 + $0x26c] sm:$0xf]  ;;  %v2846_v28 = vor.u32 %v3711_v24, %v2845_v23  ;;  %v3786_v44 = vld [vmem:[#allocation2 + $0x4cc] sm:$0xf0] }
  0xd1   :  { %v545_v39 = vpop.f32.mrf.mxu1  ;;  %v601_v52 = vmul.f32 %v4235_v19, %v600_v38  ;;  %v592_v49 = vsel %vm4231_vm4, %v4218_v63, %v587_v2  ;;  %v2850_v31 = vor.u32 %v3709_v25, %v2847_v29  ;;  %v3705_v38 = vld [vmem:[#allocation2 + $0x24c] sm:$0xf]  ;;  %v2797_v2 = vld [vmem:[#allocation2 + $0x208] sm:$0xf]  ;;  %v3820_v25 = vld [vmem:[#allocation2 + $0x5e4] sm:$0xf] }
  0xd2   :  { %v546_v46 = vadd.f32 %v545_v39, %v533_v33  ;;  %v3733_v33 = vld [vmem:[#allocation2 + $0x32c] sm:$0xf]  ;;  %1092 = vmatpush.bf16.msrb.mxu0 %v2846_v28  ;;  %v2834_v47 = vor.u32 %v3705_v38, %v2831_v42  ;;  %v3822_v38 = vld [vmem:[#allocation2 + $0x5ec] sm:$0xf0] }
  0xd3   :  { %v602_v3 = vadd.f32 %v4235_v19, %v601_v52  ;;  %1118 = vmatpush.bf16.msrb.mxu2 %v2850_v31  ;;  %v3703_v52 = vld [vmem:[#allocation2 + $0x234] sm:$0xf0]  ;;  %v3162_v31 = vld [vmem:[#allocation2 + $0x4e0] sm:$0xf] }
  0xd4   :  { %3923 = vtanh.f32 %v546_v46  ;;  %1131 = vmatpush.bf16.msrb.mxu3 %v2978_v5  ;;  %v2830_v46 = vor.u32 %v3707_v37, %v2829_v36  ;;  %v2814_v0 = vor.u32 %v3703_v52, %v2813_v51  ;;  %v3697_v5 = vld [vmem:[#allocation2 + $0x20c] sm:$0xf]  ;;  %v3290_v37 = vld [vmem:[#allocation2 + $0x5e0] sm:$0xf]  ;;  %v3818_v51 = vld [vmem:[#allocation2 + $0x5cc] sm:$0xf0] }
  0xd5   :  { %v606_v56 = vsel %vm4243_vm6, %v4235_v19, %v602_v3  ;;  %v3699_v3 = vld [vmem:[#allocation2 + $0x214] sm:$0xf0]  ;;  %v2802_v12 = vor.u32 %v3697_v5, %v2799_v6  ;;  %v3808_v52 = vld [vmem:[#allocation2 + $0x584] sm:$0xf]  ;;  %v3814_v5 = vld [vmem:[#allocation2 + $0x5ac] sm:$0xf0] }
  0xd6   :  { %v558_v4 = vpop.f32.mrf.mxu2  ;;  %v611_v20 = vsel %vm4247_vm7, %v610_v32, %v606_v56  ;;  %v3743_v32 = vld [vmem:[#allocation2 + $0x374] sm:$0xf0]  ;;  %1093 = vmatpush.bf16.msrb.mxu0 %v2830_v46  ;;  %v3784_v46 = vld [vmem:[#allocation2 + $0x4c4] sm:$0xf]  ;;  %v3247_v59 = vor.u32 %v3808_v52, %v3244_v57 }
  0xd7   :  { %v559_v9 = vadd.f32 %v558_v4, %v150_v41  ;;  %v571_v10 = vpop.f32.mrf.mxu3  ;;  %v534_v11 = vpop.f32.mrf.mxu0  ;;  %v633_v63 = vmul.f32 %v611_v20, %v80_v18  ;;  %v2974_v35 = vor.u32 %v3743_v32, %v2973_v15  ;;  %v2946_v41 = vor.u32 %v3733_v33, %v2943_v34  ;;  %1119 = vmatpush.bf16.msrb.mxu2 %v2834_v47  ;;  %v3816_v15 = vld [vmem:[#allocation2 + $0x5c4] sm:$0xf]  ;;  %v3790_v32 = vld [vmem:[#allocation2 + $0x4ec] sm:$0xf0]  ;;  %v3148_v47 = vld [vmem:[#allocation2 + $0x4d0] sm:$0xf0] }
  0xd8   :  { %1132 = vmatpush.bf16.msrb.mxu3 %v2962_v22  ;;  %v3788_v33 = vld [vmem:[#allocation2 + $0x4e4] sm:$0xf]  ;;  %v3163_v34 = vor.u32 %v3790_v32, %v3162_v31  ;;  %v3151_v48 = vor.u32 %v3784_v46, %v3148_v47 }
  0xd9   :  { %v572_v53 = vadd.f32 %v571_v10, %v559_v9  ;;  %v547_v19 = vpop.f32.mrf.mxu1  ;;  %1105 = vmatpush.bf16.msrb.mxu1 %v2974_v35  ;;  %v3731_v9 = vld [vmem:[#allocation2 + $0x314] sm:$0xf0]  ;;  %v2798_v10 = vor.u32 %v3699_v3, %v2797_v2  ;;  %v3164_v35 = vld [vmem:[#allocation2 + $0x4f0] sm:$0xf0]  ;;  %v3792_v46 = vld [vmem:[#allocation2 + $0x504] sm:$0xf] }
  0xda   :  { %v3924_v26 = vpop.eup %3923  ;;  %1094 = vmatpush.bf16.msrb.mxu0 %v2814_v0  ;;  %v2926_v13 = vor.u32 %v3731_v9, %v2925_v8  ;;  %v3167_v36 = vor.u32 %v3788_v33, %v3164_v35  ;;  %v3780_v0 = vld [vmem:[#allocation2 + $0x4a4] sm:$0xf]  ;;  %v3132_v2 = vld [vmem:[#allocation2 + $0x4b0] sm:$0xf0] }
  0xdb   :  { %v2784_v27 = vmul.f32 -1.442695, %v572_v53  ;;  %v634_v30 = vmul.f32 %v3924_v26, %v592_v49  ;;  %1120 = vmatpush.bf16.msrb.mxu2 %v2818_v1  ;;  %v3292_v26 = vld [vmem:[#allocation2 + $0x5f0] sm:$0xf0]  ;;  %v3135_v3 = vor.u32 %v3780_v0, %v3132_v2 }
  0xdc   :  { %1133 = vmatpush.bf16.msrb.mxu3 %v2946_v41  ;;  %v3260_v41 = vld [vmem:[#allocation2 + $0x5b0] sm:$0xf0] }
  0xdd   :  { %3925 = vpow2.f32 %v2784_v27  ;;  %v635_v39 = vadd.f32 %v634_v30, %v633_v63  ;;  %1106 = vmatpush.bf16.msrb.mxu1 %v2958_v55  ;;  %v3295_v27 = vor.u32 %v3820_v25, %v3292_v26  ;;  %v3276_v63 = vld [vmem:[#allocation2 + $0x5d0] sm:$0xf0]  ;;  %v3275_v55 = vor.u32 %v3818_v51, %v3274_v50  ;;  %v712_v26 = vld [vmem:[#allocation5 + $0x20] sm:$0xff]  ;;  %v3821_v50 = vld [vmem:[#allocation2 + $0x5ec] sm:$0xf] }
  0xde   :  { %v560_v40 = vpop.f32.mrf.mxu2  ;;  %1095 = vmatpush.bf16.msrb.mxu0 %v2798_v10  ;;  %v3279_v30 = vor.u32 %v3816_v15, %v3276_v63  ;;  %v3228_v8 = vld [vmem:[#allocation2 + $0x570] sm:$0xf0]  ;;  %v3114_v10 = vld [vmem:[#allocation2 + $0x480] sm:$0xf]  ;;  %v3806_v63 = vld [vmem:[#allocation2 + $0x56c] sm:$0xf0] }
  0xdf   :  { %v573_v45 = vpop.f32.mrf.mxu3  ;;  %639 = vst [vmem:[#allocation9] sm:$0xff] %v635_v39  ;;  %1121 = vmatpush.bf16.msrb.mxu2 %v2802_v12  ;;  %v3291_v40 = vor.u32 %v3822_v38, %v3290_v37  ;;  %v3778_v12 = vld [vmem:[#allocation2 + $0x48c] sm:$0xf0]  ;;  %v3226_v15 = vld [vmem:[#allocation2 + $0x560] sm:$0xf]  ;;  %v713_v38 = vld [vmem:[#allocation5 + $0x28] sm:$0xff] }
  0xe0   :  { %1134 = vmatpush.bf16.msrb.mxu3 %v2930_v58  ;;  %v3147_v45 = vor.u32 %v3786_v44, %v3146_v43  ;;  %v3227_v32 = vor.u32 %v3806_v63, %v3226_v15  ;;  %v3196_v33 = vld [vmem:[#allocation2 + $0x530] sm:$0xf0]  ;;  %v3770_v37 = vld [vmem:[#allocation2 + $0x44c] sm:$0xf0]  ;;  %v3210_v44 = vld [vmem:[#allocation2 + $0x540] sm:$0xf] }
  0xe1   :  { %1107 = vmatpush.bf16.msrb.mxu1 %v2942_v7  ;;  %v3804_v7 = vld [vmem:[#allocation2 + $0x564] sm:$0xf]  ;;  %v3300_v51 = vld [vmem:[#allocation2 + $0x5f8] sm:$0xf0] }
  0xe2   :  { %v3231_v9 = vor.u32 %v3804_v7, %v3228_v8  ;;  %v3303_v57 = vor.u32 %v3821_v50, %v3300_v51  ;;  %v3817_v8 = vld [vmem:[#allocation2 + $0x5cc] sm:$0xf]  ;;  %v3268_v15 = vld [vmem:[#allocation2 + $0x5b8] sm:$0xf0]  ;;  %v3783_v51 = vld [vmem:[#allocation2 + $0x4b4] sm:$0xf0] }
  0xe3   :  { %v3926_v62 = vpop.eup %3925  ;;  %1135 = vmatmul.bf16.vlgmr.msrb.gmra.mxu3 %v4256_v60 }
  0xe4   :  { %v617_v4 = vadd.f32 1.0, %v3926_v62  ;;  %1642 = vmatpush.bf16.msra.mxu3 %v3295_v27  ;;  %v3782_v62 = vld [vmem:[#allocation2 + $0x4ac] sm:$0xf0] }
  0xe5   :  { %1108 = vmatpush.bf16.msrb.mxu1 %v2926_v13  ;;  %v3131_v1 = vor.u32 %v3782_v62, %v3130_v61  ;;  %v3776_v13 = vld [vmem:[#allocation2 + $0x484] sm:$0xf]  ;;  %v3766_v61 = vld [vmem:[#allocation2 + $0x42c] sm:$0xf0] }
  0xe6   :  { %3927 = vrcp.f32 %v617_v4  ;;  %v629_v56 = vand.u32 2147483648, %v617_v4  ;;  %v627_v18 = vand.u32 2147483647, %v617_v4  ;;  %vm623_vm9 = vweird.f32 %v617_v4 }
  0xe7   :  { %3929 = vtanh.f32 %v635_v39  ;;  %v3812_v39 = vld [vmem:[#allocation2 + $0x5a4] sm:$0xf] }
  0xe8   :  { %1109 = vmatmul.bf16.vlgmr.msrb.gmra.mxu1 %v4256_v60  ;;  %v630_v20 = vor.u32 1.1754944e-38, %v629_v56  ;;  %vm628_vm11 = vcmp.eq.f32.partialorder %v627_v18, 8.507059e+37  ;;  %1643 = vmatpush.bf16.msra.mxu3 %v3279_v30  ;;  %v3263_v42 = vor.u32 %v3812_v39, %v3260_v41  ;;  %v3242_v56 = vld [vmem:[#allocation2 + $0x580] sm:$0xf]  ;;  %v3800_v18 = vld [vmem:[#allocation2 + $0x544] sm:$0xf] }
  0xe9   :  { %1616 = vmatpush.bf16.msra.mxu1 %v3291_v40  ;;  %v3796_v30 = vld [vmem:[#allocation2 + $0x524] sm:$0xf]  ;;  %v3084_v41 = vld [vmem:[#allocation2 + $0x450] sm:$0xf0] }
  0xea   :  { %v3199_v35 = vor.u32 %v3796_v30, %v3196_v33  ;;  %v3768_v40 = vld [vmem:[#allocation2 + $0x444] sm:$0xf]  ;;  %v3154_v33 = vld [vmem:[#allocation2 + $0x4c8] sm:$0xf] }
  0xeb   :  { %v3087_v43 = vor.u32 %v3768_v40, %v3084_v41  ;;  %v3819_v40 = vld [vmem:[#allocation2 + $0x5d4] sm:$0xf0]  ;;  %v3046_v41 = vld [vmem:[%s4468_s1 + $0x10] sm:$0xff] }
  0xec   :  { %v3928_v14 = vpop.eup %3927  ;;  %1644 = vmatpush.bf16.msra.mxu3 %v3263_v42 }
  0xed   :  { %v619_v16 = vmul.f32 %v3928_v14, %v617_v4  ;;  %vm624_vm8 = vweird.f32 %v3928_v14  ;;  %v3930_v21 = vpop.eup %3929  ;;  %1617 = vmatpush.bf16.msra.mxu1 %v3275_v55  ;;  %v3258_v4 = vld [vmem:[#allocation2 + $0x5a0] sm:$0xf] }
  0xee   :  { %vm625_vm10 = vmor %vm623_vm9, %vm624_vm8  ;;  %v3259_v6 = vor.u32 %v3814_v5, %v3258_v4  ;;  %v3194_v4 = vld [vmem:[#allocation2 + $0x520] sm:$0xf]  ;;  %v3798_v5 = vld [vmem:[#allocation2 + $0x52c] sm:$0xf0] }
  0xef   :  { %v620_v17 = vsub.f32 1.0, %v619_v16  ;;  %v3116_v16 = vld [vmem:[#allocation2 + $0x490] sm:$0xf0]  ;;  %v3195_v7 = vor.u32 %v3798_v5, %v3194_v4  ;;  %v3805_v4 = vld [vmem:[#allocation2 + $0x56c] sm:$0xf] }
  0xf0   :  { %1645 = vmatpush.bf16.msra.mxu3 %v3247_v59  ;;  %v3066_v59 = vld [vmem:[#allocation2 + $0x420] sm:$0xf]  ;;  %v3236_v5 = vld [vmem:[#allocation2 + $0x578] sm:$0xf0] }
  0xf1   :  { %v621_v11 = vmul.f32 %v3928_v14, %v620_v17  ;;  %1618 = vmatpush.bf16.msra.mxu1 %v3259_v6  ;;  %v3119_v17 = vor.u32 %v3776_v13, %v3116_v16  ;;  %v3067_v0 = vor.u32 %v3766_v61, %v3066_v59  ;;  %v3050_v13 = vld [vmem:[#allocation2 + $0x400] sm:$0xf]  ;;  %v3760_v16 = vld [vmem:[#allocation2 + $0x404] sm:$0xf]  ;;  %v3140_v61 = vld [vmem:[#allocation2 + $0x4b8] sm:$0xf0] }
  0xf2   :  { %v4277_v24 = vpop.f32.mrf.mxu1 }
  0xf3   :  { %v622_v49 = vadd.f32 %v3928_v14, %v621_v11  ;;  %v3810_v11 = vld [vmem:[#allocation2 + $0x58c] sm:$0xf0] }
  0xf4   :  { %1646 = vmatpush.bf16.msra.mxu3 %v3231_v9  ;;  %v3284_v9 = vld [vmem:[#allocation2 + $0x5d8] sm:$0xf0] }
  0xf5   :  { %v626_v53 = vsel %vm625_vm10, %v3928_v14, %v622_v49  ;;  %v3115_v14 = vor.u32 %v3778_v12, %v3114_v10  ;;  %v3287_v12 = vor.u32 %v3817_v8, %v3284_v9  ;;  %v3779_v8 = vld [vmem:[#allocation2 + $0x494] sm:$0xf0]  ;;  %v3777_v9 = vld [vmem:[#allocation2 + $0x48c] sm:$0xf] }
  0xf6   :  { %v631_v19 = vsel %vm628_vm11, %v630_v20, %v626_v53  ;;  %v3243_v20 = vor.u32 %v3810_v11, %v3242_v56  ;;  %v3212_v53 = vld [vmem:[#allocation2 + $0x550] sm:$0xf0]  ;;  %v3170_v11 = vld [vmem:[#allocation2 + $0x4e8] sm:$0xf] }
  0xf7   :  { %v637_v22 = vmul.f32 %v3930_v21, %v631_v19  ;;  %v3215_v21 = vor.u32 %v3800_v18, %v3212_v53  ;;  %v3098_v19 = vld [vmem:[#allocation2 + $0x460] sm:$0xf]  ;;  %v3052_v56 = vld [vmem:[#allocation2 + $0x410] sm:$0xf0]  ;;  %v3791_v18 = vld [vmem:[#allocation2 + $0x4f4] sm:$0xf0] }
  0xf8   :  { %1619 = vmatpush.bf16.msra.mxu1 %v3243_v20  ;;  %v3055_v20 = vor.u32 %v3760_v16, %v3052_v56  ;;  %v3171_v53 = vor.u32 %v3791_v18, %v3170_v11  ;;  %v3250_v56 = vld [vmem:[#allocation2 + $0x588] sm:$0xf]  ;;  %v3811_v11 = vld [vmem:[#allocation2 + $0x594] sm:$0xf0]  ;;  %v3801_v18 = vld [vmem:[#allocation2 + $0x54c] sm:$0xf] }
  0xf9   :  { %638 = vst [vmem:[#allocation8] sm:$0xff] %v637_v22  ;;  %v644_v23 = vpack.c.bf16 %v637_v22, %v637_v22  ;;  %v3774_v22 = vld [vmem:[#allocation2 + $0x46c] sm:$0xf0]  ;;  %1647 = vmatpush.bf16.msra.mxu3 %v3215_v21  ;;  %v3789_v21 = vld [vmem:[#allocation2 + $0x4ec] sm:$0xf] }
  0xfa   :  { %v1060_v28 = vpop.f32.mrf.mxu1  ;;  %v3099_v27 = vor.u32 %v3774_v22, %v3098_v19  ;;  %v3172_v19 = vld [vmem:[#allocation2 + $0x4f8] sm:$0xf0] }
  0xfb   :  { %1044 = vmatmul.bf16.vlgmr.msra.gmra.mxu0 %v644_v23  ;;  %1070 = vmatmul.bf16.vlgmr.msra.gmra.mxu2 %v644_v23  ;;  %v3100_v28 = vld [vmem:[#allocation2 + $0x470] sm:$0xf0]  ;;  %v3175_v22 = vor.u32 %v3789_v21, %v3172_v19  ;;  %v3251_v19 = vor.u32 %v3811_v11, %v3250_v56  ;;  %v2786_v56 = vld [vmem:[%s4469_s2 + $0x8] sm:$0xff] }
  0xfc   :  { %1603 = vmatpush.bf16.msra.mxu0 %v3163_v34  ;;  %1629 = vmatpush.bf16.msra.mxu2 %v3167_v36  ;;  %v3082_v36 = vld [vmem:[#allocation2 + $0x440] sm:$0xf] }
  0xfd   :  { %1620 = vmatpush.bf16.msra.mxu1 %v3227_v32  ;;  %v3083_v39 = vor.u32 %v3770_v37, %v3082_v36  ;;  %1648 = vmatpush.bf16.msra.mxu3 %v3199_v35  ;;  %v3785_v36 = vld [vmem:[#allocation2 + $0x4cc] sm:$0xf]  ;;  %v3156_v37 = vld [vmem:[#allocation2 + $0x4d8] sm:$0xf0] }
 0x100   :  { %1604 = vmatpush.bf16.msra.mxu0 %v3147_v45  ;;  %1630 = vmatpush.bf16.msra.mxu2 %v3151_v48  ;;  %v3802_v45 = vld [vmem:[#allocation2 + $0x54c] sm:$0xf0]  ;;  %v3180_v48 = vld [vmem:[#allocation2 + $0x510] sm:$0xf0] }
 0x101   :  { %v3211_v47 = vor.u32 %v3802_v45, %v3210_v44  ;;  %v3183_v55 = vor.u32 %v3792_v46, %v3180_v48  ;;  %v3809_v44 = vld [vmem:[#allocation2 + $0x58c] sm:$0xf]  ;;  %v3252_v45 = vld [vmem:[#allocation2 + $0x598] sm:$0xf0]  ;;  %v3138_v46 = vld [vmem:[#allocation2 + $0x4a8] sm:$0xf] }
 0x102   :  { %v715_v48 = vld [vmem:[#allocation5 + $0x38] sm:$0xff]  ;;  %v3255_v50 = vor.u32 %v3809_v44, %v3252_v45  ;;  %v3139_v59 = vor.u32 %v3783_v51, %v3138_v46  ;;  %v3218_v51 = vld [vmem:[#allocation2 + $0x548] sm:$0xf] }
 0x103   :  { %1621 = vmatpush.bf16.msra.mxu1 %v3211_v47  ;;  %1649 = vmatpush.bf16.msra.mxu3 %v3183_v55  ;;  %v4293_v47 = vpack.c.bf16 %v3046_v41, %v3046_v41  ;;  %v3090_v41 = vld [vmem:[#allocation2 + $0x448] sm:$0xf] }
 0x104   :  { %1605 = vmatpush.bf16.msra.mxu0 %v3131_v1  ;;  %1631 = vmatpush.bf16.msra.mxu2 %v3135_v3  ;;  %v3068_v1 = vld [vmem:[#allocation2 + $0x430] sm:$0xf0] }
 0x106   :  { %1650 = vmatmul.bf16.vlgmr.msra.gmra.mxu3 %v4293_v47 }
 0x107   :  { %1694 = vmatpush.bf16.msrb.mxu3 %v3303_v57  ;;  %1622 = vmatpush.bf16.msra.mxu1 %v3195_v7  ;;  %v714_v57 = vld [vmem:[#allocation5 + $0x30] sm:$0xff]  ;;  %v3122_v7 = vld [vmem:[#allocation2 + $0x488] sm:$0xf] }
 0x108   :  { %1606 = vmatpush.bf16.msra.mxu0 %v3115_v14  ;;  %1632 = vmatpush.bf16.msra.mxu2 %v3119_v17  ;;  %v3762_v14 = vld [vmem:[#allocation2 + $0x40c] sm:$0xf0] }
 0x109   :  { %v3051_v17 = vor.u32 %v3762_v14, %v3050_v13  ;;  %v3124_v13 = vld [vmem:[#allocation2 + $0x498] sm:$0xf0] }
 0x10a   :  { %v3127_v21 = vor.u32 %v3777_v9, %v3124_v13  ;;  %v3076_v9 = vld [vmem:[#allocation2 + $0x438] sm:$0xf0]  ;;  %v3799_v13 = vld [vmem:[#allocation2 + $0x534] sm:$0xf0] }
 0x10b   :  { %1096 = vmatmul.bf16.vlgmr.msrb.gmra.mxu0 %v644_v23  ;;  %1122 = vmatmul.bf16.vlgmr.msrb.gmra.mxu2 %v644_v23  ;;  %v3772_v23 = vld [vmem:[#allocation2 + $0x464] sm:$0xf] }
 0x10c   :  { %1607 = vmatpush.bf16.msra.mxu0 %v3099_v27  ;;  %1695 = vmatpush.bf16.msrb.mxu3 %v3287_v12 }
 0x110   :  { %1608 = vmatpush.bf16.msra.mxu0 %v3083_v39 }
 0x114   :  { %1609 = vmatpush.bf16.msra.mxu0 %v3067_v0  ;;  %v3815_v0 = vld [vmem:[#allocation2 + $0x5b4] sm:$0xf0] }
 0x118   :  { %1610 = vmatpush.bf16.msra.mxu0 %v3051_v17  ;;  %v3123_v17 = vor.u32 %v3779_v8, %v3122_v7  ;;  %v3765_v8 = vld [vmem:[#allocation2 + $0x42c] sm:$0xf] }
 0x119   :  { %v3079_v11 = vor.u32 %v3765_v8, %v3076_v9  ;;  %v3850_v8 = vld [vmem:[#allocation2 + $0x6cc] sm:$0xf0] }
 0x11c   :  { %1655 = vmatpush.bf16.msrb.mxu0 %v3171_v53 }
 0x13c   :  { %v4279_v60 = vpop.f32.mrf.mxu3 }
 0x144   :  { %v1086_v29 = vpop.f32.mrf.mxu3 }
 0x145   :  { %v3103_v29 = vor.u32 %v3772_v23, %v3100_v28  ;;  %v3178_v23 = vld [vmem:[#allocation2 + $0x500] sm:$0xf]  ;;  %v3823_v28 = vld [vmem:[#allocation2 + $0x5f4] sm:$0xf0] }
 0x147   :  { %1633 = vmatpush.bf16.msra.mxu2 %v3103_v29  ;;  %v3813_v29 = vld [vmem:[#allocation2 + $0x5ac] sm:$0xf] }
 0x148   :  { %v3271_v32 = vor.u32 %v3813_v29, %v3268_v15  ;;  %v3773_v29 = vld [vmem:[#allocation2 + $0x46c] sm:$0xf] }
 0x14a   :  { %1696 = vmatpush.bf16.msrb.mxu3 %v3271_v32  ;;  %v3108_v32 = vld [vmem:[#allocation2 + $0x478] sm:$0xf0] }
 0x14b   :  { %1634 = vmatpush.bf16.msra.mxu2 %v3087_v43 }
 0x14e   :  { %1697 = vmatpush.bf16.msrb.mxu3 %v3255_v50  ;;  %v3092_v50 = vld [vmem:[#allocation2 + $0x458] sm:$0xf0] }
 0x165   :  { %v4283_v58 = vpop.f32.mrf.mxu1 }
 0x166   :  { %v4281_v54 = vpop.f32.mrf.mxu3 }
 0x16d   :  { %v1112_v25 = vpop.f32.mrf.mxu1 }
 0x16e   :  { %v1138_v49 = vpop.f32.mrf.mxu3  ;;  %v3298_v25 = vld [vmem:[#allocation2 + $0x5e8] sm:$0xf] }
 0x178   :  { %v1045_v31 = vpop.f32.mrf.mxu0 }
 0x179   :  { %v1046_v34 = vadd.f32 %v1045_v31, %v712_v26  ;;  %v3299_v31 = vor.u32 %v3823_v28, %v3298_v25  ;;  %v3775_v28 = vld [vmem:[#allocation2 + $0x474] sm:$0xf0] }
 0x17b   :  { %v1059_v42 = vadd.f32 %v4277_v24, %v1046_v34  ;;  %v3764_v24 = vld [vmem:[#allocation2 + $0x424] sm:$0xf]  ;;  %v3787_v34 = vld [vmem:[#allocation2 + $0x4d4] sm:$0xf0] }
 0x17c   :  { %v3071_v3 = vor.u32 %v3764_v24, %v3068_v1  ;;  %v3155_v35 = vor.u32 %v3787_v34, %v3154_v33  ;;  %v3234_v33 = vld [vmem:[#allocation2 + $0x568] sm:$0xf] }
 0x17d   :  { %v3043_v52 = vmul.f32 -1.442695, %v1059_v42  ;;  %v3159_v42 = vor.u32 %v3785_v36, %v3156_v37  ;;  %v3807_v36 = vld [vmem:[#allocation2 + $0x574] sm:$0xf0]  ;;  %v3797_v37 = vld [vmem:[#allocation2 + $0x52c] sm:$0xf] }
 0x17e   :  { %v1071_v62 = vpop.f32.mrf.mxu2  ;;  %1635 = vmatpush.bf16.msra.mxu2 %v3071_v3  ;;  %1656 = vmatpush.bf16.msrb.mxu0 %v3155_v35  ;;  %v3235_v45 = vor.u32 %v3807_v36, %v3234_v33 }
 0x17f   :  { %3931 = vpow2.f32 %v3043_v52  ;;  %v1072_v2 = vadd.f32 %v1071_v62, %v713_v38  ;;  %v3282_v38 = vld [vmem:[#allocation2 + $0x5c8] sm:$0xf]  ;;  %v3781_v52 = vld [vmem:[#allocation2 + $0x4ac] sm:$0xf] }
 0x180   :  { %v1047_v6 = vpop.f32.mrf.mxu0  ;;  %v3283_v43 = vor.u32 %v3819_v40, %v3282_v38  ;;  %v3266_v62 = vld [vmem:[#allocation2 + $0x5a8] sm:$0xf]  ;;  %v3204_v38 = vld [vmem:[#allocation2 + $0x538] sm:$0xf0] }
 0x181   :  { %v1085_v10 = vadd.f32 %v4279_v60, %v1072_v2  ;;  %v3794_v60 = vld [vmem:[#allocation2 + $0x50c] sm:$0xf0]  ;;  %v3143_v2 = vor.u32 %v3781_v52, %v3140_v61  ;;  %v3267_v3 = vor.u32 %v3815_v0, %v3266_v62  ;;  %v3239_v6 = vor.u32 %v3805_v4, %v3236_v5  ;;  %v3803_v61 = vld [vmem:[#allocation2 + $0x554] sm:$0xf0]  ;;  %v3793_v62 = vld [vmem:[#allocation2 + $0x50c] sm:$0xf] }
 0x182   :  { %1636 = vmatpush.bf16.msra.mxu2 %v3055_v20  ;;  %v3179_v27 = vor.u32 %v3794_v60, %v3178_v23  ;;  %1657 = vmatpush.bf16.msrb.mxu0 %v3139_v59  ;;  %v3207_v46 = vor.u32 %v3797_v37, %v3204_v38  ;;  %v3219_v0 = vor.u32 %v3803_v61, %v3218_v51  ;;  %v3537_v51 = vld [vmem:[#allocation2 + $0x7d0] sm:$0xf0] }
 0x183   :  { %v3044_v49 = vmul.f32 -1.442695, %v1085_v10  ;;  %1698 = vmatpush.bf16.msrb.mxu3 %v3239_v6 }
 0x184   :  { %1623 = vmatpush.bf16.msra.mxu1 %v3179_v27  ;;  %v3106_v27 = vld [vmem:[#allocation2 + $0x468] sm:$0xf] }
 0x185   :  { %v3932_v26 = vpop.eup %3931  ;;  %3933 = vpow2.f32 %v3044_v49 }
 0x186   :  { %v4287_v63 = vadd.f32 1.0, %v3932_v26  ;;  %v1073_v30 = vpop.f32.mrf.mxu2  ;;  %1681 = vmatpush.bf16.msrb.mxu2 %v3175_v22  ;;  %v3220_v22 = vld [vmem:[#allocation2 + $0x558] sm:$0xf0]  ;;  %1658 = vmatpush.bf16.msrb.mxu0 %v3123_v17 }
 0x187   :  { %1624 = vmatmul.bf16.vlgmr.msra.gmra.mxu1 %v4293_v47  ;;  %v3223_v26 = vor.u32 %v3801_v18, %v3220_v22 }
 0x188   :  { %3935 = vrcp.f32 %v4287_v63  ;;  %v1097_v39 = vpop.f32.mrf.mxu0  ;;  %1668 = vmatpush.bf16.msrb.mxu1 %v3299_v31  ;;  %v1155_v1 = vand.u32 2147483648, %v4287_v63  ;;  %v1153_v20 = vand.u32 2147483647, %v4287_v63  ;;  %v3107_v31 = vor.u32 %v3775_v28, %v3106_v27 }
 0x189   :  { %v1098_v49 = vadd.f32 %v1097_v39, %v714_v57  ;;  %1699 = vmatpush.bf16.msrb.mxu3 %v3223_v26  ;;  %vm1149_vm13 = vweird.f32 %v4287_v63  ;;  %v3854_v57 = vld [vmem:[#allocation2 + $0x6ec] sm:$0xf0] }
 0x18a   :  { %1682 = vmatpush.bf16.msrb.mxu2 %v3159_v42  ;;  %v4306_v60 = vor.u32 1.1754944e-38, %v1155_v1  ;;  %1659 = vmatpush.bf16.msrb.mxu0 %v3107_v31  ;;  %v3771_v42 = vld [vmem:[#allocation2 + $0x454] sm:$0xf0]  ;;  %v3188_v1 = vld [vmem:[#allocation2 + $0x518] sm:$0xf0]  ;;  %vm1154_vm1 = vcmp.eq.f32.partialorder %v1153_v20, 8.507059e+37 }
 0x18b   :  { %v3934_v55 = vpop.eup %3933  ;;  %v1111_v35 = vadd.f32 %v4283_v58, %v1098_v49  ;;  %v3769_v58 = vld [vmem:[#allocation2 + $0x44c] sm:$0xf]  ;;  %v3191_v6 = vor.u32 %v3793_v62, %v3188_v1  ;;  %v3425_v62 = vld [vmem:[#allocation2 + $0x6f0] sm:$0xf0]  ;;  %v3551_v1 = vld [vmem:[#allocation2 + $0x7e0] sm:$0xf] }
 0x18c   :  { %v4296_v24 = vadd.f32 1.0, %v3934_v55  ;;  %1669 = vmatpush.bf16.msrb.mxu1 %v3283_v43  ;;  %v3095_v59 = vor.u32 %v3769_v58, %v3092_v50  ;;  %v3880_v50 = vld [vmem:[#allocation2 + $0x7c4] sm:$0xf]  ;;  %v3505_v49 = vld [vmem:[#allocation2 + $0x790] sm:$0xf0] }
 0x18d   :  { %1700 = vmatpush.bf16.msrb.mxu3 %v3207_v46 }
 0x18e   :  { %v4300_v10 = vpop.eup %3935  ;;  %3937 = vrcp.f32 %v4296_v24  ;;  %v1123_v12 = vpop.f32.mrf.mxu2  ;;  %1683 = vmatpush.bf16.msrb.mxu2 %v3143_v2  ;;  %v1172_v43 = vand.u32 2147483647, %v4296_v24  ;;  %v1174_v55 = vand.u32 2147483648, %v4296_v24  ;;  %v3074_v2 = vld [vmem:[#allocation2 + $0x428] sm:$0xf]  ;;  %vm1168_vm0 = vweird.f32 %v4296_v24 }
 0x18f   :  { %v1145_v14 = vmul.f32 %v4300_v10, %v4287_v63  ;;  %v1124_v16 = vadd.f32 %v1123_v12, %v715_v48  ;;  %vm1150_vm12 = vweird.f32 %v4300_v10  ;;  %v3091_v48 = vor.u32 %v3771_v42, %v3090_v41  ;;  %v3202_v12 = vld [vmem:[#allocation2 + $0x528] sm:$0xf]  ;;  %v3060_v63 = vld [vmem:[#allocation2 + $0x418] sm:$0xf0] }
 0x190   :  { %v1099_v53 = vpop.f32.mrf.mxu0  ;;  %1670 = vmatpush.bf16.msrb.mxu1 %v3267_v3  ;;  %vm4324_vm14 = vmor %vm1149_vm13, %vm1150_vm12  ;;  %v3767_v3 = vld [vmem:[#allocation2 + $0x434] sm:$0xf0]  ;;  %vm1173_vm3 = vcmp.eq.f32.partialorder %v1172_v43, 8.507059e+37  ;;  %v3884_v43 = vld [vmem:[#allocation2 + $0x7e4] sm:$0xf] }
 0x191   :  { %v1146_v23 = vsub.f32 1.0, %v1145_v14  ;;  %v1137_v25 = vadd.f32 %v4281_v54, %v1124_v16  ;;  %v3111_v54 = vor.u32 %v3773_v29, %v3108_v32  ;;  %1660 = vmatpush.bf16.msrb.mxu0 %v3091_v48  ;;  %v3075_v7 = vor.u32 %v3767_v3, %v3074_v2  ;;  %v3058_v14 = vld [vmem:[#allocation2 + $0x408] sm:$0xf]  ;;  %v3763_v16 = vld [vmem:[#allocation2 + $0x414] sm:$0xf0]  ;;  %1701 = vmatpush.bf16.msrb.mxu3 %v3191_v6 }
 0x192   :  { %1684 = vmatpush.bf16.msrb.mxu2 %v3127_v21  ;;  %v3203_v21 = vor.u32 %v3799_v13, %v3202_v12  ;;  %v3059_v22 = vor.u32 %v3763_v16, %v3058_v14  ;;  %v3886_v2 = vld [vmem:[#allocation2 + $0x7ec] sm:$0xf0]  ;;  %v3876_v3 = vld [vmem:[#allocation2 + $0x7a4] sm:$0xf]  ;;  %v3409_v14 = vld [vmem:[#allocation2 + $0x6d0] sm:$0xf0] }
 0x193   :  { %v1147_v15 = vmul.f32 %v4300_v10, %v1146_v23  ;;  %v3045_v30 = vmul.f32 -1.442695, %v1137_v25  ;;  %v3186_v23 = vld [vmem:[#allocation2 + $0x508] sm:$0xf]  ;;  %v3848_v13 = vld [vmem:[#allocation2 + $0x6c4] sm:$0xf] }
 0x194   :  { %v4310_v34 = vpop.eup %3937  ;;  %1671 = vmatpush.bf16.msrb.mxu1 %v3251_v19  ;;  %v3761_v19 = vld [vmem:[#allocation2 + $0x40c] sm:$0xf]  ;;  %1702 = vmatmul.bf16.vlgmr.msrb.gmra.mxu3 %v4293_v47  ;;  %v3412_v16 = vor.u32 %v3848_v13, %v3409_v14  ;;  %v3856_v13 = vld [vmem:[#allocation2 + $0x704] sm:$0xf] }
 0x195   :  { %v1164_v39 = vmul.f32 %v4310_v34, %v4296_v24  ;;  %v1148_v40 = vadd.f32 %v4300_v10, %v1147_v15  ;;  %3939 = vpow2.f32 %v3045_v30  ;;  %vm1169_vm15 = vweird.f32 %v4310_v34  ;;  %1661 = vmatpush.bf16.msrb.mxu0 %v3075_v7  ;;  %v3407_v7 = vld [vmem:[#allocation2 + $0x6c0] sm:$0xf] }
 0x196   :  { %v1125_v44 = vpop.f32.mrf.mxu2  ;;  %1685 = vmatpush.bf16.msrb.mxu2 %v3111_v54  ;;  %3941 = vtanh.f32 %v1111_v35  ;;  %vm4343_vm2 = vmor %vm1168_vm0, %vm1169_vm15  ;;  %v1175_v24 = vor.u32 1.1754944e-38, %v1174_v55  ;;  %v3063_v29 = vor.u32 %v3761_v19, %v3060_v63  ;;  %v3423_v55 = vld [vmem:[#allocation2 + $0x6e0] sm:$0xf]  ;;  %v3408_v12 = vor.u32 %v3850_v8, %v3407_v7  ;;  %v3844_v19 = vld [vmem:[#allocation2 + $0x6a4] sm:$0xf] }
 0x197   :  { %v1165_v52 = vsub.f32 1.0, %v1164_v39  ;;  %v1152_v5 = vsel %vm4324_vm14, %v4300_v10, %v1148_v40  ;;  %v3553_v44 = vld [vmem:[#allocation2 + $0x7f0] sm:$0xf0]  ;;  %v3424_v61 = vor.u32 %v3854_v57, %v3423_v55  ;;  %v3471_v8 = vld [vmem:[#allocation2 + $0x740] sm:$0xf] }
 0x198   :  { %1672 = vmatpush.bf16.msrb.mxu1 %v3235_v45  ;;  %v1157_v18 = vsel %vm1154_vm1, %v4306_v60, %v1152_v5  ;;  %v3795_v60 = vld [vmem:[#allocation2 + $0x514] sm:$0xf0]  ;;  %v3556_v45 = vor.u32 %v3884_v43, %v3553_v44  ;;  %v3521_v5 = vld [vmem:[#allocation2 + $0x7b0] sm:$0xf0]  ;;  %v3836_v43 = vld [vmem:[#allocation2 + $0x664] sm:$0xf] }
 0x199   :  { %v1166_v4 = vmul.f32 %v4310_v34, %v1165_v52  ;;  %v3187_v15 = vor.u32 %v3795_v60, %v3186_v23  ;;  %1662 = vmatpush.bf16.msrb.mxu0 %v3059_v22  ;;  %v3540_v52 = vor.u32 %v3880_v50, %v3537_v51  ;;  %v3524_v6 = vor.u32 %v3876_v3, %v3521_v5  ;;  %v3519_v23 = vld [vmem:[#allocation2 + $0x7a0] sm:$0xf]  ;;  %v3878_v60 = vld [vmem:[#allocation2 + $0x7ac] sm:$0xf0]  ;;  %v3345_v5 = vld [vmem:[#allocation2 + $0x650] sm:$0xf0] }
 0x19a   :  { %1686 = vmatpush.bf16.msrb.mxu2 %v3095_v59  ;;  %2209 = vmatpush.bf16.msra.mxu3 %v3556_v45  ;;  %v3852_v59 = vld [vmem:[#allocation2 + $0x6e4] sm:$0xf]  ;;  %v3487_v50 = vld [vmem:[#allocation2 + $0x760] sm:$0xf]  ;;  %v3870_v51 = vld [vmem:[#allocation2 + $0x76c] sm:$0xf0] }
 0x19b   :  { %v3940_v17 = vpop.eup %3939  ;;  %v1167_v10 = vadd.f32 %v4310_v34, %v1166_v4  ;;  %v3552_v4 = vor.u32 %v3886_v2, %v3551_v1  ;;  %v1279_v44 = vld [vmem:[#allocation5 + $0x40] sm:$0xff]  ;;  %v3488_v57 = vor.u32 %v3870_v51, %v3487_v50  ;;  %v3834_v1 = vld [vmem:[#allocation2 + $0x64c] sm:$0xf0]  ;;  %v1280_v2 = vld [vmem:[#allocation5 + $0x48] sm:$0xff] }
 0x19c   :  { %v1182_v53 = vadd.f32 1.0, %v3940_v17  ;;  %1673 = vmatpush.bf16.msrb.mxu1 %v3219_v0  ;;  %v3942_v25 = vpop.eup %3941  ;;  %v3428_v0 = vor.u32 %v3852_v59, %v3425_v62  ;;  %v3535_v17 = vld [vmem:[#allocation2 + $0x7c0] sm:$0xf]  ;;  %v3457_v59 = vld [vmem:[#allocation2 + $0x730] sm:$0xf0] }
 0x19d   :  { %v1171_v20 = vsel %vm4343_vm2, %v4310_v34, %v1167_v10  ;;  %v1199_v28 = vmul.f32 %v3942_v25, %v1157_v18  ;;  %v3872_v10 = vld [vmem:[#allocation2 + $0x784] sm:$0xf]  ;;  %v3520_v25 = vor.u32 %v3878_v60, %v3519_v23  ;;  %v3455_v23 = vld [vmem:[#allocation2 + $0x720] sm:$0xf]  ;;  %v3862_v60 = vld [vmem:[#allocation2 + $0x72c] sm:$0xf0] }
 0x19e   :  { %v1176_v26 = vsel %vm1173_vm3, %v1175_v24, %v1171_v20  ;;  %3943 = vrcp.f32 %v1182_v53  ;;  %1687 = vmatpush.bf16.msrb.mxu2 %v3079_v11  ;;  %v1194_v34 = vand.u32 2147483648, %v1182_v53  ;;  %v1192_v54 = vand.u32 2147483647, %v1182_v53  ;;  %2210 = vmatpush.bf16.msra.mxu3 %v3540_v52  ;;  %v3393_v20 = vld [vmem:[#allocation2 + $0x6b0] sm:$0xf0] }
 0x19f   :  { %v1198_v27 = vmul.f32 %v2786_v56, %v1176_v26  ;;  %vm1188_vm5 = vweird.f32 %v1182_v53  ;;  %v3882_v56 = vld [vmem:[#allocation2 + $0x7cc] sm:$0xf0]  ;;  %v3508_v24 = vor.u32 %v3872_v10, %v3505_v49  ;;  %v3396_v22 = vor.u32 %v3844_v19, %v3393_v20  ;;  %v3868_v26 = vld [vmem:[#allocation2 + $0x764] sm:$0xf]  ;;  %v3529_v50 = vld [vmem:[#allocation2 + $0x7b8] sm:$0xf0] }
 0x1a0   :  { %1674 = vmatpush.bf16.msrb.mxu1 %v3203_v21  ;;  %v1195_v37 = vor.u32 1.1754944e-38, %v1194_v34  ;;  %vm1193_vm7 = vcmp.eq.f32.partialorder %v1192_v54, 8.507059e+37  ;;  %v3536_v18 = vor.u32 %v3882_v56, %v3535_v17  ;;  %v3846_v21 = vld [vmem:[#allocation2 + $0x6ac] sm:$0xf0]  ;;  %v3860_v52 = vld [vmem:[#allocation2 + $0x724] sm:$0xf] }
 0x1a1   :  { %v1200_v30 = vadd.f32 %v1199_v28, %v1198_v27  ;;  %v3489_v27 = vld [vmem:[#allocation2 + $0x770] sm:$0xf0]  ;;  %v3874_v54 = vld [vmem:[#allocation2 + $0x78c] sm:$0xf0]  ;;  %v3460_v62 = vor.u32 %v3860_v52, %v3457_v59  ;;  %v3885_v17 = vld [vmem:[#allocation2 + $0x7ec] sm:$0xf] }
 0x1a2   :  { %1688 = vmatpush.bf16.msrb.mxu2 %v3063_v29  ;;  %2211 = vmatpush.bf16.msra.mxu3 %v3524_v6  ;;  %v3492_v28 = vor.u32 %v3868_v26, %v3489_v27  ;;  %v3375_v29 = vld [vmem:[#allocation2 + $0x680] sm:$0xf]  ;;  %v3561_v56 = vld [vmem:[#allocation2 + $0x7f8] sm:$0xf0]  ;;  %v3456_v26 = vor.u32 %v3862_v60, %v3455_v23  ;;  %v3881_v27 = vld [vmem:[#allocation2 + $0x7cc] sm:$0xf] }
 0x1a3   :  { %1206 = vst [vmem:[#allocation9 + $0x8] sm:$0xff] %v1200_v30  ;;  %3945 = vtanh.f32 %v1200_v30  ;;  %v3840_v30 = vld [vmem:[#allocation2 + $0x684] sm:$0xf]  ;;  %v3564_v49 = vor.u32 %v3885_v17, %v3561_v56  ;;  %v3415_v59 = vld [vmem:[#allocation2 + $0x6c8] sm:$0xf] }
 0x1a4   :  { %v3944_v31 = vpop.eup %3943  ;;  %1675 = vmatpush.bf16.msrb.mxu1 %v3187_v15  ;;  %v3842_v15 = vld [vmem:[#allocation2 + $0x68c] sm:$0xf0]  ;;  %v3847_v56 = vld [vmem:[#allocation2 + $0x6b4] sm:$0xf0]  ;;  %v3869_v23 = vld [vmem:[#allocation2 + $0x76c] sm:$0xf] }
 0x1a5   :  { %v1184_v32 = vmul.f32 %v3944_v31, %v1182_v53  ;;  %vm1189_vm4 = vweird.f32 %v3944_v31  ;;  %v3391_v53 = vld [vmem:[#allocation2 + $0x6a0] sm:$0xf]  ;;  %v3497_v60 = vld [vmem:[#allocation2 + $0x778] sm:$0xf0] }
 0x1a6   :  { %vm1190_vm6 = vmor %vm1188_vm5, %vm1189_vm4  ;;  %v3392_v63 = vor.u32 %v3846_v21, %v3391_v53  ;;  %2212 = vmatpush.bf16.msra.mxu3 %v3508_v24  ;;  %v3327_v24 = vld [vmem:[#allocation2 + $0x620] sm:$0xf]  ;;  %v3830_v53 = vld [vmem:[#allocation2 + $0x62c] sm:$0xf0] }
 0x1a7   :  { %v1185_v33 = vsub.f32 1.0, %v1184_v32  ;;  %1676 = vmatmul.bf16.vlgmr.msrb.gmra.mxu1 %v4293_v47  ;;  %v4352_v47 = vpop.f32.mrf.mxu3  ;;  %v3376_v32 = vor.u32 %v3842_v15, %v3375_v29  ;;  %v3328_v19 = vor.u32 %v3830_v53, %v3327_v24  ;;  %v3401_v53 = vld [vmem:[#allocation2 + $0x6b8] sm:$0xf0] }
 0x1a8   :  { %2183 = vmatpush.bf16.msra.mxu1 %v3552_v4  ;;  %v3832_v4 = vld [vmem:[#allocation2 + $0x644] sm:$0xf] }
 0x1a9   :  { %v1186_v35 = vmul.f32 %v3944_v31, %v1185_v33  ;;  %v3946_v39 = vpop.eup %3945  ;;  %v3377_v33 = vld [vmem:[#allocation2 + $0x690] sm:$0xf0]  ;;  %v3348_v7 = vor.u32 %v3832_v4, %v3345_v5  ;;  %v3883_v4 = vld [vmem:[#allocation2 + $0x7d4] sm:$0xf0] }
 0x1aa   :  { %2213 = vmatpush.bf16.msra.mxu3 %v3492_v28  ;;  %v3380_v34 = vor.u32 %v3840_v30, %v3377_v33  ;;  %v3545_v28 = vld [vmem:[#allocation2 + $0x7d8] sm:$0xf0]  ;;  %v3311_v30 = vld [vmem:[#allocation2 + $0x600] sm:$0xf] }
 0x1ab   :  { %v1187_v36 = vadd.f32 %v3944_v31, %v1186_v35  ;;  %v3503_v35 = vld [vmem:[#allocation2 + $0x780] sm:$0xf]  ;;  %v3548_v15 = vor.u32 %v3881_v27, %v3545_v28  ;;  %v3307_v5 = vld [vmem:[%s4468_s1 + $0x18] sm:$0xff]  ;;  %v3841_v28 = vld [vmem:[#allocation2 + $0x68c] sm:$0xf] }
 0x1ac   :  { %2184 = vmatpush.bf16.msra.mxu1 %v3536_v18  ;;  %v3843_v27 = vld [vmem:[#allocation2 + $0x694] sm:$0xf0] }
 0x1ad   :  { %v1191_v38 = vsel %vm1190_vm6, %v3944_v31, %v1187_v36  ;;  %v3864_v36 = vld [vmem:[#allocation2 + $0x744] sm:$0xf] }
 0x1ae   :  { %v1196_v40 = vsel %vm1193_vm7, %v1195_v37, %v1191_v38  ;;  %v3504_v37 = vor.u32 %v3874_v54, %v3503_v35  ;;  %v3473_v38 = vld [vmem:[#allocation2 + $0x750] sm:$0xf0]  ;;  %v3431_v35 = vld [vmem:[#allocation2 + $0x6e8] sm:$0xf]  ;;  %v3855_v54 = vld [vmem:[#allocation2 + $0x6f4] sm:$0xf0] }
 0x1af   :  { %v1202_v41 = vmul.f32 %v3946_v39, %v1196_v40  ;;  %v1653_v46 = vpop.f32.mrf.mxu3  ;;  %v3476_v40 = vor.u32 %v3864_v36, %v3473_v38  ;;  %v3432_v38 = vor.u32 %v3855_v54, %v3431_v35  ;;  %v3875_v35 = vld [vmem:[#allocation2 + $0x794] sm:$0xf0]  ;;  %v3865_v54 = vld [vmem:[#allocation2 + $0x74c] sm:$0xf] }
 0x1b0   :  { %2185 = vmatpush.bf16.msra.mxu1 %v3520_v25  ;;  %v3361_v46 = vld [vmem:[#allocation2 + $0x670] sm:$0xf0] }
 0x1b1   :  { %1204 = vst [vmem:[#allocation8 + $0x8] sm:$0xff] %v1202_v41  ;;  %v1211_v42 = vpack.c.bf16 %v1202_v41, %v1202_v41  ;;  %v3359_v41 = vld [vmem:[#allocation2 + $0x660] sm:$0xf]  ;;  %2214 = vmatpush.bf16.msra.mxu3 %v3476_v40  ;;  %v3433_v40 = vld [vmem:[#allocation2 + $0x6f8] sm:$0xf0] }
 0x1b3   :  { %1611 = vmatmul.bf16.vlgmr.msra.gmra.mxu0 %v1211_v42  ;;  %1637 = vmatmul.bf16.vlgmr.msra.gmra.mxu2 %v1211_v42 }
 0x1b4   :  { %2170 = vmatpush.bf16.msra.mxu0 %v3424_v61  ;;  %2196 = vmatpush.bf16.msra.mxu2 %v3428_v0  ;;  %v3343_v0 = vld [vmem:[#allocation2 + $0x640] sm:$0xf] }
 0x1b5   :  { %2186 = vmatpush.bf16.msra.mxu1 %v3504_v37  ;;  %v3344_v3 = vor.u32 %v3834_v1, %v3343_v0  ;;  %2215 = vmatpush.bf16.msra.mxu3 %v3460_v62  ;;  %v3849_v0 = vld [vmem:[#allocation2 + $0x6cc] sm:$0xf]  ;;  %v3417_v1 = vld [vmem:[#allocation2 + $0x6d8] sm:$0xf0] }
 0x1b8   :  { %2171 = vmatpush.bf16.msra.mxu0 %v3408_v12  ;;  %2197 = vmatpush.bf16.msra.mxu2 %v3412_v16  ;;  %v3866_v12 = vld [vmem:[#allocation2 + $0x74c] sm:$0xf0]  ;;  %v3441_v16 = vld [vmem:[#allocation2 + $0x710] sm:$0xf0] }
 0x1b9   :  { %2187 = vmatpush.bf16.msra.mxu1 %v3488_v57  ;;  %v3472_v14 = vor.u32 %v3866_v12, %v3471_v8  ;;  %v3444_v18 = vor.u32 %v3856_v13, %v3441_v16  ;;  %v3873_v8 = vld [vmem:[#allocation2 + $0x78c] sm:$0xf]  ;;  %v3513_v12 = vld [vmem:[#allocation2 + $0x798] sm:$0xf0]  ;;  %v3399_v13 = vld [vmem:[#allocation2 + $0x6a8] sm:$0xf] }
 0x1ba   :  { %v1282_v16 = vld [vmem:[#allocation5 + $0x58] sm:$0xff]  ;;  %v3516_v17 = vor.u32 %v3873_v8, %v3513_v12  ;;  %v3400_v24 = vor.u32 %v3847_v56, %v3399_v13  ;;  %v3479_v56 = vld [vmem:[#allocation2 + $0x748] sm:$0xf] }
 0x1bb   :  { %2216 = vmatpush.bf16.msra.mxu3 %v3444_v18 }
 0x1bc   :  { %2172 = vmatpush.bf16.msra.mxu0 %v3392_v63  ;;  %2198 = vmatpush.bf16.msra.mxu2 %v3396_v22  ;;  %v3329_v63 = vld [vmem:[#allocation2 + $0x630] sm:$0xf0] }
 0x1bd   :  { %2188 = vmatpush.bf16.msra.mxu1 %v3472_v14  ;;  %v4368_v14 = vpack.c.bf16 %v3307_v5, %v3307_v5  ;;  %v3351_v5 = vld [vmem:[#allocation2 + $0x648] sm:$0xf] }
 0x1bf   :  { %2261 = vmatpush.bf16.msrb.mxu3 %v3564_v49  ;;  %v1281_v49 = vld [vmem:[#allocation5 + $0x50] sm:$0xff] }
 0x1c0   :  { %2173 = vmatpush.bf16.msra.mxu0 %v3376_v32  ;;  %2199 = vmatpush.bf16.msra.mxu2 %v3380_v34  ;;  %v3824_v32 = vld [vmem:[#allocation2 + $0x604] sm:$0xf]  ;;  %v3313_v34 = vld [vmem:[#allocation2 + $0x610] sm:$0xf0] }
 0x1c1   :  { %2189 = vmatpush.bf16.msra.mxu1 %v3456_v26  ;;  %v3316_v37 = vor.u32 %v3824_v32, %v3313_v34  ;;  %2217 = vmatmul.bf16.vlgmr.msra.gmra.mxu3 %v4368_v14  ;;  %v3383_v26 = vld [vmem:[#allocation2 + $0x688] sm:$0xf] }
 0x1c2   :  { %v3511_v34 = vld [vmem:[#allocation2 + $0x788] sm:$0xf] }
 0x1c3   :  { %1663 = vmatmul.bf16.vlgmr.msrb.gmra.mxu0 %v1211_v42  ;;  %1689 = vmatmul.bf16.vlgmr.msrb.gmra.mxu2 %v1211_v42  ;;  %v3838_v42 = vld [vmem:[#allocation2 + $0x66c] sm:$0xf0] }
 0x1c4   :  { %v3360_v45 = vor.u32 %v3838_v42, %v3359_v41  ;;  %2262 = vmatpush.bf16.msrb.mxu3 %v3548_v15  ;;  %v3439_v42 = vld [vmem:[#allocation2 + $0x700] sm:$0xf] }
 0x1c6   :  { %2174 = vmatpush.bf16.msra.mxu0 %v3360_v45 }
 0x1ca   :  { %2175 = vmatpush.bf16.msra.mxu0 %v3344_v3 }
 0x1ce   :  { %2176 = vmatpush.bf16.msra.mxu0 %v3328_v19  ;;  %v3879_v19 = vld [vmem:[#allocation2 + $0x7b4] sm:$0xf0] }
 0x204   :  { %v4354_v58 = vpop.f32.mrf.mxu1 }
 0x20c   :  { %v1627_v48 = vpop.f32.mrf.mxu1 }
 0x20d   :  { %v3364_v48 = vor.u32 %v3836_v43, %v3361_v46  ;;  %v3559_v43 = vld [vmem:[#allocation2 + $0x7e8] sm:$0xf]  ;;  %v3887_v46 = vld [vmem:[#allocation2 + $0x7f4] sm:$0xf0] }
 0x20f   :  { %2200 = vmatpush.bf16.msra.mxu2 %v3364_v48  ;;  %v3877_v48 = vld [vmem:[#allocation2 + $0x7ac] sm:$0xf] }
 0x210   :  { %v3532_v57 = vor.u32 %v3877_v48, %v3529_v50  ;;  %v3837_v48 = vld [vmem:[#allocation2 + $0x66c] sm:$0xf] }
 0x212   :  { %2263 = vmatpush.bf16.msrb.mxu3 %v3532_v57  ;;  %v3369_v57 = vld [vmem:[#allocation2 + $0x678] sm:$0xf0] }
 0x213   :  { %2201 = vmatpush.bf16.msra.mxu2 %v3348_v7 }
 0x216   :  { %2264 = vmatpush.bf16.msrb.mxu3 %v3516_v17  ;;  %v3353_v17 = vld [vmem:[#allocation2 + $0x658] sm:$0xf0] }
 0x217   :  { %v4356_v9 = vpop.f32.mrf.mxu3 }
 0x21f   :  { %v1705_v31 = vpop.f32.mrf.mxu3 }
 0x220   :  { %v3826_v31 = vld [vmem:[#allocation2 + $0x60c] sm:$0xf0] }
 0x221   :  { %v3312_v33 = vor.u32 %v3826_v31, %v3311_v30  ;;  %v3385_v30 = vld [vmem:[#allocation2 + $0x698] sm:$0xf0] }
 0x223   :  { %2177 = vmatpush.bf16.msra.mxu0 %v3312_v33  ;;  %v3384_v33 = vor.u32 %v3843_v27, %v3383_v26  ;;  %v3829_v27 = vld [vmem:[#allocation2 + $0x62c] sm:$0xf] }
 0x224   :  { %v4358_v11 = vpop.f32.mrf.mxu1 }
 0x227   :  { %2222 = vmatpush.bf16.msrb.mxu0 %v3432_v38 }
 0x22c   :  { %v1679_v39 = vpop.f32.mrf.mxu1 }
 0x22d   :  { %v3853_v39 = vld [vmem:[#allocation2 + $0x6ec] sm:$0xf] }
 0x22e   :  { %v3436_v41 = vor.u32 %v3853_v39, %v3433_v40  ;;  %v3388_v39 = vor.u32 %v3841_v28, %v3385_v30  ;;  %v3512_v40 = vor.u32 %v3875_v35, %v3511_v34  ;;  %v3337_v28 = vld [vmem:[#allocation2 + $0x638] sm:$0xf0]  ;;  %v3863_v30 = vld [vmem:[#allocation2 + $0x734] sm:$0xf0]  ;;  %v3047_v34 = vld [vmem:[%s4469_s2 + $0x10] sm:$0xff] }
 0x22f   :  { %v3340_v35 = vor.u32 %v3829_v27, %v3337_v28  ;;  %v3610_v27 = vld [vmem:[#allocation7 + $0x50] sm:$0xf]  ;;  %v3899_v28 = vld [vmem:[#allocation7 + $0x54] sm:$0xf0] }
 0x230   :  { %v1612_v55 = vpop.f32.mrf.mxu0 }
 0x231   :  { %v1613_v61 = vadd.f32 %v1612_v55, %v1279_v44  ;;  %v3560_v55 = vor.u32 %v3887_v46, %v3559_v43  ;;  %v3839_v46 = vld [vmem:[#allocation2 + $0x674] sm:$0xf0] }
 0x233   :  { %v1626_v6 = vadd.f32 %v4354_v58, %v1613_v61  ;;  %v3828_v58 = vld [vmem:[#allocation2 + $0x624] sm:$0xf]  ;;  %v3851_v61 = vld [vmem:[#allocation2 + $0x6d4] sm:$0xf0] }
 0x234   :  { %v3332_v22 = vor.u32 %v3828_v58, %v3329_v63  ;;  %v3416_v62 = vor.u32 %v3851_v61, %v3415_v59  ;;  %v3495_v59 = vld [vmem:[#allocation2 + $0x768] sm:$0xf] }
 0x235   :  { %v3304_v10 = vmul.f32 -1.442695, %v1626_v6  ;;  %v3420_v6 = vor.u32 %v3849_v0, %v3417_v1  ;;  %v3871_v0 = vld [vmem:[#allocation2 + $0x774] sm:$0xf0]  ;;  %v3861_v1 = vld [vmem:[#allocation2 + $0x72c] sm:$0xf] }
 0x236   :  { %v1638_v21 = vpop.f32.mrf.mxu2  ;;  %2202 = vmatpush.bf16.msra.mxu2 %v3332_v22  ;;  %2223 = vmatpush.bf16.msrb.mxu0 %v3416_v62  ;;  %v3496_v12 = vor.u32 %v3871_v0, %v3495_v59 }
 0x237   :  { %3947 = vpow2.f32 %v3304_v10  ;;  %v1639_v20 = vadd.f32 %v1638_v21, %v1280_v2  ;;  %v3543_v2 = vld [vmem:[#allocation2 + $0x7c8] sm:$0xf]  ;;  %v3845_v10 = vld [vmem:[#allocation2 + $0x6ac] sm:$0xf] }
 0x238   :  { %v1614_v25 = vpop.f32.mrf.mxu0  ;;  %v3544_v7 = vor.u32 %v3883_v4, %v3543_v2  ;;  %v3527_v21 = vld [vmem:[#allocation2 + $0x7a8] sm:$0xf]  ;;  %v3465_v2 = vld [vmem:[#allocation2 + $0x738] sm:$0xf0] }
 0x239   :  { %v1652_v29 = vadd.f32 %v4352_v47, %v1639_v20  ;;  %v3858_v47 = vld [vmem:[#allocation2 + $0x70c] sm:$0xf0]  ;;  %v3404_v20 = vor.u32 %v3845_v10, %v3401_v53  ;;  %v3528_v22 = vor.u32 %v3879_v19, %v3527_v21  ;;  %v3500_v25 = vor.u32 %v3869_v23, %v3497_v60  ;;  %v3867_v53 = vld [vmem:[#allocation2 + $0x754] sm:$0xf0]  ;;  %v3857_v21 = vld [vmem:[#allocation2 + $0x70c] sm:$0xf] }
 0x23a   :  { %2203 = vmatpush.bf16.msra.mxu2 %v3316_v37  ;;  %v3440_v45 = vor.u32 %v3858_v47, %v3439_v42  ;;  %2224 = vmatpush.bf16.msrb.mxu0 %v3400_v24  ;;  %v3468_v13 = vor.u32 %v3861_v1, %v3465_v2  ;;  %v3480_v19 = vor.u32 %v3867_v53, %v3479_v56  ;;  %v3903_v56 = vld [vmem:[#allocation7 + $0x74] sm:$0xf0] }
 0x23b   :  { %v3305_v36 = vmul.f32 -1.442695, %v1652_v29  ;;  %2265 = vmatpush.bf16.msrb.mxu3 %v3500_v25 }
 0x23c   :  { %2190 = vmatpush.bf16.msra.mxu1 %v3440_v45  ;;  %v3367_v45 = vld [vmem:[#allocation2 + $0x668] sm:$0xf] }
 0x23d   :  { %v3948_v44 = vpop.eup %3947  ;;  %3949 = vpow2.f32 %v3305_v36 }
 0x23e   :  { %v4362_v51 = vadd.f32 1.0, %v3948_v44  ;;  %v1640_v52 = vpop.f32.mrf.mxu2  ;;  %2248 = vmatpush.bf16.msrb.mxu2 %v3436_v41  ;;  %v3481_v41 = vld [vmem:[#allocation2 + $0x758] sm:$0xf0]  ;;  %2225 = vmatpush.bf16.msrb.mxu0 %v3384_v33 }
 0x23f   :  { %2191 = vmatmul.bf16.vlgmr.msra.gmra.mxu1 %v4368_v14  ;;  %v3484_v44 = vor.u32 %v3865_v54, %v3481_v41 }
 0x240   :  { %3951 = vrcp.f32 %v4362_v51  ;;  %v1664_v3 = vpop.f32.mrf.mxu0  ;;  %2235 = vmatpush.bf16.msrb.mxu1 %v3560_v55  ;;  %v1722_v63 = vand.u32 2147483648, %v4362_v51  ;;  %v1720_v37 = vand.u32 2147483647, %v4362_v51  ;;  %v3368_v55 = vor.u32 %v3839_v46, %v3367_v45 }
 0x241   :  { %v1665_v36 = vadd.f32 %v1664_v3, %v1281_v49  ;;  %2266 = vmatpush.bf16.msrb.mxu3 %v3484_v44  ;;  %vm1716_vm9 = vweird.f32 %v4362_v51  ;;  %v3628_v49 = vld [vmem:[#allocation7 + $0x78] sm:$0xf0] }
 0x242   :  { %2249 = vmatpush.bf16.msrb.mxu2 %v3420_v6  ;;  %v4381_v47 = vor.u32 1.1754944e-38, %v1722_v63  ;;  %2226 = vmatpush.bf16.msrb.mxu0 %v3368_v55  ;;  %v3835_v6 = vld [vmem:[#allocation2 + $0x654] sm:$0xf0]  ;;  %v3449_v63 = vld [vmem:[#allocation2 + $0x718] sm:$0xf0]  ;;  %vm1721_vm13 = vcmp.eq.f32.partialorder %v1720_v37, 8.507059e+37 }
 0x243   :  { %v3950_v18 = vpop.eup %3949  ;;  %v1678_v62 = vadd.f32 %v4358_v11, %v1665_v36  ;;  %v3833_v11 = vld [vmem:[#allocation2 + $0x64c] sm:$0xf]  ;;  %v3452_v25 = vor.u32 %v3857_v21, %v3449_v63  ;;  %v1846_v21 = vld [vmem:[#allocation5 + $0x60] sm:$0xff]  ;;  %v3901_v63 = vld [vmem:[#allocation7 + $0x64] sm:$0xf0] }
 0x244   :  { %v4371_v58 = vadd.f32 1.0, %v3950_v18  ;;  %2236 = vmatpush.bf16.msrb.mxu1 %v3544_v7  ;;  %v3356_v24 = vor.u32 %v3833_v11, %v3353_v17  ;;  %v3626_v17 = vld [vmem:[#allocation7 + $0x70] sm:$0xf]  ;;  %v3897_v36 = vld [vmem:[#allocation7 + $0x44] sm:$0xf0] }
 0x245   :  { %2267 = vmatpush.bf16.msrb.mxu3 %v3468_v13 }
 0x246   :  { %v4375_v29 = vpop.eup %3951  ;;  %3953 = vrcp.f32 %v4371_v58  ;;  %v1690_v15 = vpop.f32.mrf.mxu2  ;;  %2250 = vmatpush.bf16.msrb.mxu2 %v3404_v20  ;;  %v1739_v7 = vand.u32 2147483647, %v4371_v58  ;;  %v1741_v18 = vand.u32 2147483648, %v4371_v58  ;;  %v3335_v20 = vld [vmem:[#allocation2 + $0x628] sm:$0xf]  ;;  %vm1735_vm12 = vweird.f32 %v4371_v58 }
 0x247   :  { %v1712_v31 = vmul.f32 %v4375_v29, %v4362_v51  ;;  %v1691_v32 = vadd.f32 %v1690_v15, %v1282_v16  ;;  %vm1717_vm8 = vweird.f32 %v4375_v29  ;;  %v3352_v16 = vor.u32 %v3835_v6, %v3351_v5  ;;  %v3463_v15 = vld [vmem:[#allocation2 + $0x728] sm:$0xf]  ;;  %v3321_v51 = vld [vmem:[#allocation2 + $0x618] sm:$0xf0] }
 0x248   :  { %v1666_v38 = vpop.f32.mrf.mxu0  ;;  %2237 = vmatpush.bf16.msrb.mxu1 %v3528_v22  ;;  %vm4399_vm10 = vmor %vm1716_vm9, %vm1717_vm8  ;;  %v3831_v22 = vld [vmem:[#allocation2 + $0x634] sm:$0xf0]  ;;  %vm1740_vm15 = vcmp.eq.f32.partialorder %v1739_v7, 8.507059e+37 }
 0x249   :  { %v1713_v42 = vsub.f32 1.0, %v1712_v31  ;;  %v1704_v43 = vadd.f32 %v4356_v9, %v1691_v32  ;;  %v3372_v9 = vor.u32 %v3837_v48, %v3369_v57  ;;  %2227 = vmatpush.bf16.msrb.mxu0 %v3352_v16  ;;  %v3336_v26 = vor.u32 %v3831_v22, %v3335_v20  ;;  %v3319_v31 = vld [vmem:[#allocation2 + $0x608] sm:$0xf]  ;;  %v3827_v32 = vld [vmem:[#allocation2 + $0x614] sm:$0xf0]  ;;  %2268 = vmatpush.bf16.msrb.mxu3 %v3452_v25 }
 0x24a   :  { %2251 = vmatpush.bf16.msrb.mxu2 %v3388_v39  ;;  %v3464_v39 = vor.u32 %v3863_v30, %v3463_v15  ;;  %v3320_v41 = vor.u32 %v3827_v32, %v3319_v31  ;;  %v3900_v20 = vld [vmem:[#allocation7 + $0x64] sm:$0xf]  ;;  %v3898_v15 = vld [vmem:[#allocation7 + $0x54] sm:$0xf]  ;;  %v3611_v31 = vor.u32 %v3899_v28, %v3610_v27  ;;  %v3612_v32 = vld [vmem:[#allocation7 + $0x58] sm:$0xf0] }
 0x24b   :  { %v1714_v50 = vmul.f32 %v4375_v29, %v1713_v42  ;;  %v3306_v52 = vmul.f32 -1.442695, %v1704_v43  ;;  %v3447_v42 = vld [vmem:[#allocation2 + $0x708] sm:$0xf] }
 0x24c   :  { %v4385_v61 = vpop.eup %3953  ;;  %2238 = vmatpush.bf16.msrb.mxu1 %v3512_v40  ;;  %v3825_v40 = vld [vmem:[#allocation2 + $0x60c] sm:$0xf]  ;;  %2269 = vmatmul.bf16.vlgmr.msrb.gmra.mxu3 %v4368_v14 }
 0x24d   :  { %v1731_v3 = vmul.f32 %v4385_v61, %v4371_v58  ;;  %v1715_v4 = vadd.f32 %v4375_v29, %v1714_v50  ;;  %3955 = vpow2.f32 %v3306_v52  ;;  %vm1736_vm11 = vweird.f32 %v4385_v61  ;;  %2228 = vmatpush.bf16.msrb.mxu0 %v3336_v26 }
 0x24e   :  { %v1692_v8 = vpop.f32.mrf.mxu2  ;;  %2252 = vmatpush.bf16.msrb.mxu2 %v3372_v9  ;;  %3957 = vtanh.f32 %v1678_v62  ;;  %vm4418_vm14 = vmor %vm1735_vm12, %vm1736_vm11  ;;  %v1742_v58 = vor.u32 1.1754944e-38, %v1741_v18  ;;  %v3324_v48 = vor.u32 %v3825_v40, %v3321_v51  ;;  %v3627_v18 = vor.u32 %v3903_v56, %v3626_v17  ;;  %v3604_v40 = vld [vmem:[#allocation7 + $0x48] sm:$0xf0]  ;;  %v1849_v17 = vld [vmem:[#allocation5 + $0x78] sm:$0xff] }
 0x24f   :  { %v1732_v10 = vsub.f32 1.0, %v1731_v3  ;;  %v1719_v60 = vsel %vm4399_vm10, %v4375_v29, %v1715_v4  ;;  %v3888_v56 = vld [vmem:[#allocation7 + $0x4] sm:$0xf] }
 0x250   :  { %2239 = vmatpush.bf16.msrb.mxu1 %v3496_v12  ;;  %v1724_v54 = vsel %vm1721_vm13, %v4381_v47, %v1719_v60  ;;  %v3859_v47 = vld [vmem:[#allocation2 + $0x714] sm:$0xf0] }
 0x251   :  { %v1733_v23 = vmul.f32 %v4385_v61, %v1732_v10  ;;  %v3448_v50 = vor.u32 %v3859_v47, %v3447_v42  ;;  %2229 = vmatpush.bf16.msrb.mxu0 %v3320_v41  ;;  %v3902_v10 = vld [vmem:[#allocation7 + $0x74] sm:$0xf]  ;;  %v3594_v42 = vld [vmem:[#allocation7 + $0x30] sm:$0xf]  ;;  %v3895_v47 = vld [vmem:[#allocation7 + $0x34] sm:$0xf0] }
 0x252   :  { %2253 = vmatpush.bf16.msrb.mxu2 %v3356_v24  ;;  %v3631_v24 = vor.u32 %v3902_v10, %v3628_v49  ;;  %v3572_v10 = vld [vmem:[#allocation7 + $0x8] sm:$0xf0] }
 0x253   :  { %v3956_v33 = vpop.eup %3955  ;;  %v1734_v29 = vadd.f32 %v4385_v61, %v1733_v23  ;;  %v3620_v23 = vld [vmem:[#allocation7 + $0x68] sm:$0xf0] }
 0x254   :  { %v1749_v38 = vadd.f32 1.0, %v3956_v33  ;;  %2240 = vmatpush.bf16.msrb.mxu1 %v3480_v19  ;;  %v3958_v43 = vpop.eup %3957  ;;  %v3618_v19 = vld [vmem:[#allocation7 + $0x60] sm:$0xf]  ;;  %v3623_v25 = vor.u32 %v3900_v20, %v3620_v23  ;;  %v1847_v33 = vld [vmem:[#allocation5 + $0x68] sm:$0xff] }
 0x255   :  { %v1738_v37 = vsel %vm4418_vm14, %v4385_v61, %v1734_v29  ;;  %v1766_v46 = vmul.f32 %v3958_v43, %v1724_v54  ;;  %v3619_v22 = vor.u32 %v3901_v63, %v3618_v19  ;;  %v3602_v54 = vld [vmem:[#allocation7 + $0x40] sm:$0xf]  ;;  %v3894_v43 = vld [vmem:[#allocation7 + $0x34] sm:$0xf]  ;;  %v3575_v63 = vor.u32 %v3888_v56, %v3572_v10 }
 0x256   :  { %v1743_v44 = vsel %vm1740_vm15, %v1742_v58, %v1738_v37  ;;  %3959 = vrcp.f32 %v1749_v38  ;;  %2254 = vmatpush.bf16.msrb.mxu2 %v3340_v35  ;;  %v1761_v61 = vand.u32 2147483648, %v1749_v38  ;;  %v1759_v9 = vand.u32 2147483647, %v1749_v38  ;;  %v3896_v58 = vld [vmem:[#allocation7 + $0x44] sm:$0xf] }
 0x257   :  { %v1765_v45 = vmul.f32 %v3047_v34, %v1743_v44  ;;  %vm1755_vm1 = vweird.f32 %v1749_v38  ;;  %v3615_v34 = vor.u32 %v3898_v15, %v3612_v32  ;;  %v3607_v37 = vor.u32 %v3896_v58, %v3604_v40 }
 0x258   :  { %2241 = vmatpush.bf16.msrb.mxu1 %v3464_v39  ;;  %v1762_v1 = vor.u32 1.1754944e-38, %v1761_v61  ;;  %vm1760_vm3 = vcmp.eq.f32.partialorder %v1759_v9, 8.507059e+37  ;;  %v3603_v39 = vor.u32 %v3897_v36, %v3602_v54  ;;  %v3588_v9 = vld [vmem:[#allocation7 + $0x28] sm:$0xf0] }
 0x259   :  { %v1767_v52 = vadd.f32 %v1766_v46, %v1765_v45  ;;  %v3595_v45 = vor.u32 %v3895_v47, %v3594_v42  ;;  %v3596_v46 = vld [vmem:[#allocation7 + $0x38] sm:$0xf0] }
 0x25a   :  { %2255 = vmatpush.bf16.msrb.mxu2 %v3324_v48  ;;  %v3599_v48 = vor.u32 %v3894_v43, %v3596_v46 }
 0x25b   :  { %1773 = vst [vmem:[#allocation9 + $0x10] sm:$0xff] %v1767_v52  ;;  %3961 = vtanh.f32 %v1767_v52 }
 0x25c   :  { %v3960_v55 = vpop.eup %3959  ;;  %2242 = vmatpush.bf16.msrb.mxu1 %v3448_v50 }
 0x25d   :  { %v1751_v57 = vmul.f32 %v3960_v55, %v1749_v38  ;;  %vm1756_vm0 = vweird.f32 %v3960_v55 }
 0x25e   :  { %vm1757_vm2 = vmor %vm1755_vm1, %vm1756_vm0 }
 0x25f   :  { %v1752_v59 = vsub.f32 1.0, %v1751_v57  ;;  %2243 = vmatmul.bf16.vlgmr.msrb.gmra.mxu1 %v4368_v14  ;;  %v2218_v14 = vpop.f32.mrf.mxu3  ;;  %v3586_v57 = vld [vmem:[#allocation7 + $0x20] sm:$0xf] }
 0x260   :  { %2453 = vmatpush.bf16.msra.mxu1 %v3631_v24 }
 0x261   :  { %v1753_v62 = vmul.f32 %v3960_v55, %v1752_v59  ;;  %v3962_v3 = vpop.eup %3961  ;;  %v3893_v59 = vld [vmem:[#allocation7 + $0x24] sm:$0xf0] }
 0x262   :  { %v3587_v61 = vor.u32 %v3893_v59, %v3586_v57 }
 0x263   :  { %v1754_v0 = vadd.f32 %v3960_v55, %v1753_v62  ;;  %v3892_v62 = vld [vmem:[#allocation7 + $0x24] sm:$0xf] }
 0x264   :  { %2454 = vmatpush.bf16.msra.mxu1 %v3623_v25 }
 0x265   :  { %v1758_v2 = vsel %vm1757_vm2, %v3960_v55, %v1754_v0  ;;  %v3578_v0 = vld [vmem:[#allocation7 + $0x10] sm:$0xf] }
 0x266   :  { %v1763_v4 = vsel %vm1760_vm3, %v1762_v1, %v1758_v2  ;;  %v3891_v2 = vld [vmem:[#allocation7 + $0x14] sm:$0xf0] }
 0x267   :  { %v1769_v5 = vmul.f32 %v3962_v3, %v1763_v4  ;;  %v2220_v7 = vpop.f32.mrf.mxu3  ;;  %v3591_v3 = vor.u32 %v3892_v62, %v3588_v9  ;;  %v3579_v4 = vor.u32 %v3891_v2, %v3578_v0  ;;  %v2358_v2 = vld [vmem:[%s4473_s6] sm:$0xff] }
 0x268   :  { %2455 = vmatpush.bf16.msra.mxu1 %v3615_v34 }
 0x269   :  { %1771 = vst [vmem:[#allocation8 + $0x10] sm:$0xff] %v1769_v5  ;;  %v1778_v6 = vpack.c.bf16 %v1769_v5, %v1769_v5  ;;  %v3890_v5 = vld [vmem:[#allocation7 + $0x14] sm:$0xf] }
 0x26b   :  { %2178 = vmatmul.bf16.vlgmr.msra.gmra.mxu0 %v1778_v6  ;;  %2204 = vmatmul.bf16.vlgmr.msra.gmra.mxu2 %v1778_v6 }
 0x26c   :  { %2440 = vmatpush.bf16.msra.mxu0 %v3627_v18  ;;  %2456 = vmatpush.bf16.msra.mxu1 %v3607_v37  ;;  %v1848_v18 = vld [vmem:[#allocation5 + $0x70] sm:$0xff] }
 0x270   :  { %2441 = vmatpush.bf16.msra.mxu0 %v3619_v22  ;;  %2457 = vmatpush.bf16.msra.mxu1 %v3599_v48 }
 0x274   :  { %2442 = vmatpush.bf16.msra.mxu0 %v3611_v31  ;;  %2458 = vmatpush.bf16.msra.mxu1 %v3591_v3  ;;  %v2359_v3 = vld [vmem:[%s4473_s6 + $0x8] sm:$0xff]  ;;  %s2490_s6 = sshll.u32 %s4122_s24, 4  ;;  %s2491_s6 = int_to_ptr.vmem [resolvable:$true] %s2490_s6 }
 0x278   :  { %2443 = vmatpush.bf16.msra.mxu0 %v3603_v39 }
 0x27b   :  { %2230 = vmatmul.bf16.vlgmr.msrb.gmra.mxu0 %v1778_v6  ;;  %2256 = vmatmul.bf16.vlgmr.msrb.gmra.mxu2 %v1778_v6  ;;  %v3580_v6 = vld [vmem:[#allocation7 + $0x18] sm:$0xf0] }
 0x27c   :  { %2444 = vmatpush.bf16.msra.mxu0 %v3595_v45 }
 0x280   :  { %2445 = vmatpush.bf16.msra.mxu0 %v3587_v61 }
 0x284   :  { %2446 = vmatpush.bf16.msra.mxu0 %v3579_v4 }
 0x2bc   :  { %v2192_v11 = vpop.f32.mrf.mxu1 }
 0x2c4   :  { %v2194_v8 = vpop.f32.mrf.mxu1 }
 0x2c5   :  { %v3583_v8 = vor.u32 %v3890_v5, %v3580_v6 }
 0x2c7   :  { %2459 = vmatpush.bf16.msra.mxu1 %v3583_v8 }
 0x2cb   :  { %2460 = vmatpush.bf16.msra.mxu1 %v3575_v63 }
 0x2cf   :  { %v4427_v12 = vpop.f32.mrf.mxu3 }
 0x2d7   :  { %v2272_v16 = vpop.f32.mrf.mxu3 }
 0x2dc   :  { %v4429_v13 = vpop.f32.mrf.mxu1 }
 0x2e4   :  { %v2246_v53 = vpop.f32.mrf.mxu1 }
 0x2e8   :  { %v2179_v60 = vpop.f32.mrf.mxu0 }
 0x2e9   :  { %v2180_v26 = vadd.f32 %v2179_v60, %v1846_v21 }
 0x2eb   :  { %v2193_v30 = vadd.f32 %v2192_v11, %v2180_v26  ;;  %v3889_v11 = vld [vmem:[#allocation7 + $0x4] sm:$0xf0] }
 0x2ed   :  { %v3565_v29 = vmul.f32 -1.442695, %v2193_v30 }
 0x2ee   :  { %v2205_v35 = vpop.f32.mrf.mxu2 }
 0x2ef   :  { %3963 = vpow2.f32 %v3565_v29  ;;  %v2206_v38 = vadd.f32 %v2205_v35, %v1847_v33 }
 0x2f0   :  { %v2181_v51 = vpop.f32.mrf.mxu0 }
 0x2f1   :  { %v2219_v41 = vadd.f32 %v2218_v14, %v2206_v38  ;;  %v3570_v14 = vld [vmem:[#allocation7] sm:$0xf]  ;;  %v3308_v38 = vld [vmem:[%s4469_s2 + $0x18] sm:$0xff] }
 0x2f2   :  { %v3571_v49 = vor.u32 %v3889_v11, %v3570_v14 }
 0x2f3   :  { %v3566_v44 = vmul.f32 -1.442695, %v2219_v41 }
 0x2f4   :  { %2447 = vmatpush.bf16.msra.mxu0 %v3571_v49 }
 0x2f5   :  { %v3964_v50 = vpop.eup %3963  ;;  %3965 = vpow2.f32 %v3566_v44 }
 0x2f6   :  { %v4431_v52 = vadd.f32 1.0, %v3964_v50  ;;  %v2207_v55 = vpop.f32.mrf.mxu2 }
 0x2f8   :  { %3967 = vrcp.f32 %v4431_v52  ;;  %v2231_v1 = vpop.f32.mrf.mxu0  ;;  %v2289_v31 = vand.u32 2147483648, %v4431_v52  ;;  %vm2283_vm5 = vweird.f32 %v4431_v52  ;;  %v2287_v34 = vand.u32 2147483647, %v4431_v52 }
 0x2f9   :  { %v2232_v20 = vadd.f32 %v2231_v1, %v1848_v18 }
 0x2fa   :  { %vm2288_vm9 = vcmp.eq.f32.partialorder %v2287_v34, 8.507059e+37 }
 0x2fb   :  { %v3966_v7 = vpop.eup %3965  ;;  %v2245_v28 = vadd.f32 %v4429_v13, %v2232_v20  ;;  %v2290_v13 = vor.u32 1.1754944e-38, %v2289_v31 }
 0x2fc   :  { %v2296_v16 = vadd.f32 1.0, %v3966_v7 }
 0x2fe   :  { %v3968_v24 = vpop.eup %3967  ;;  %3969 = vrcp.f32 %v2296_v16  ;;  %v2257_v53 = vpop.f32.mrf.mxu2  ;;  %v2306_v54 = vand.u32 2147483647, %v2296_v16  ;;  %vm2302_vm8 = vweird.f32 %v2296_v16 }
 0x2ff   :  { %v2279_v21 = vmul.f32 %v3968_v24, %v4431_v52  ;;  %v2258_v19 = vadd.f32 %v2257_v53, %v1849_v17  ;;  %vm2284_vm4 = vweird.f32 %v3968_v24 }
 0x300   :  { %v2233_v22 = vpop.f32.mrf.mxu0  ;;  %vm2285_vm6 = vmor %vm2283_vm5, %vm2284_vm4  ;;  %vm2307_vm11 = vcmp.eq.f32.partialorder %v2306_v54, 8.507059e+37 }
 0x301   :  { %v2280_v23 = vsub.f32 1.0, %v2279_v21  ;;  %v2271_v60 = vadd.f32 %v4427_v12, %v2258_v19  ;;  %v2308_v12 = vand.u32 2147483648, %v2296_v16 }
 0x303   :  { %v2281_v25 = vmul.f32 %v3968_v24, %v2280_v23  ;;  %v3567_v26 = vmul.f32 -1.442695, %v2271_v60  ;;  %v2309_v40 = vor.u32 1.1754944e-38, %v2308_v12 }
 0x304   :  { %v3970_v27 = vpop.eup %3969 }
 0x305   :  { %v2298_v15 = vmul.f32 %v3970_v27, %v2296_v16  ;;  %v2282_v30 = vadd.f32 %v3968_v24, %v2281_v25  ;;  %3971 = vpow2.f32 %v3567_v26  ;;  %vm2303_vm7 = vweird.f32 %v3970_v27 }
 0x306   :  { %v2259_v32 = vpop.f32.mrf.mxu2  ;;  %3973 = vtanh.f32 %v2245_v28  ;;  %vm2304_vm10 = vmor %vm2302_vm8, %vm2303_vm7 }
 0x307   :  { %v2299_v33 = vsub.f32 1.0, %v2298_v15  ;;  %v2286_v35 = vsel %vm2285_vm6, %v3968_v24, %v2282_v30 }
 0x308   :  { %v2291_v39 = vsel %vm2288_vm9, %v2290_v13, %v2286_v35 }
 0x309   :  { %v2300_v29 = vmul.f32 %v3970_v27, %v2299_v33 }
 0x30b   :  { %v3972_v36 = vpop.eup %3971  ;;  %v2301_v58 = vadd.f32 %v3970_v27, %v2300_v29 }
 0x30c   :  { %v2316_v51 = vadd.f32 1.0, %v3972_v36  ;;  %v3974_v41 = vpop.eup %3973 }
 0x30d   :  { %v2305_v37 = vsel %vm2304_vm10, %v3970_v27, %v2301_v58  ;;  %v2333_v43 = vmul.f32 %v3974_v41, %v2291_v39 }
 0x30e   :  { %v2310_v42 = vsel %vm2307_vm11, %v2309_v40, %v2305_v37  ;;  %3975 = vrcp.f32 %v2316_v51  ;;  %v2328_v50 = vand.u32 2147483648, %v2316_v51  ;;  %v2326_v55 = vand.u32 2147483647, %v2316_v51 }
 0x30f   :  { %v2332_v47 = vmul.f32 %v3308_v38, %v2310_v42  ;;  %vm2322_vm13 = vweird.f32 %v2316_v51 }
 0x310   :  { %v2329_v59 = vor.u32 1.1754944e-38, %v2328_v50  ;;  %vm2327_vm15 = vcmp.eq.f32.partialorder %v2326_v55, 8.507059e+37 }
 0x311   :  { %v2334_v44 = vadd.f32 %v2333_v43, %v2332_v47 }
 0x313   :  { %2340 = vst [vmem:[#allocation9 + $0x18] sm:$0xff] %v2334_v44  ;;  %3977 = vtanh.f32 %v2334_v44 }
 0x314   :  { %v3976_v45 = vpop.eup %3975  ;;  %2511 = dma.vmem_to_hbm [thread:$0]  %s2504_s29, 512, %s2506_s10, [#allocation10], %s4120_s27, %s4120_s27, %s4121_s3  }
 0x315   :  { %v2318_v46 = vmul.f32 %v3976_v45, %v2316_v51  ;;  %vm2323_vm12 = vweird.f32 %v3976_v45 }
 0x316   :  { %vm2324_vm14 = vmor %vm2322_vm13, %vm2323_vm12 }
 0x317   :  { %v2319_v48 = vsub.f32 1.0, %v2318_v46 }
 0x319   :  { %v2320_v52 = vmul.f32 %v3976_v45, %v2319_v48  ;;  %v3978_v62 = vpop.eup %3977 }
 0x31b   :  { %v2321_v57 = vadd.f32 %v3976_v45, %v2320_v52 }
 0x31d   :  { %v2325_v61 = vsel %vm2324_vm14, %v3976_v45, %v2321_v57 }
 0x31e   :  { %v2330_v9 = vsel %vm2327_vm15, %v2329_v59, %v2325_v61 }
 0x31f   :  { %v2336_v0 = vmul.f32 %v3978_v62, %v2330_v9 }
 0x321   :  { %2338 = vst [vmem:[#allocation8 + $0x18] sm:$0xff] %v2336_v0  ;;  %v2341_v1 = vpack.c.bf16 %v2336_v0, %v2336_v0 }
 0x322   :  { %2498 = dma.vmem_to_hbm [thread:$0]  %s2491_s6, 512, %s2493_s5, [#allocation4], %s4120_s27, %s4120_s27, %s4121_s3  }
 0x323   :  { %2448 = vmatmul.bf16.vlgmr.msra.gmra.mxu0 %v2341_v1  ;;  %2461 = vmatmul.bf16.vlgmr.msra.gmra.mxu1 %v2341_v1 }
 0x3a0   :  { %v2449_v4 = vpop.f32.mrf.mxu0  ;;  %v2462_v5 = vpop.f32.mrf.mxu1 }
 0x3a1   :  { %v2450_v6 = vadd.f32 %v2449_v4, %v2358_v2  ;;  %v2463_v14 = vadd.f32 %v2462_v5, %v2359_v3 }
 0x3a3   :  { %v2466_v11 = vmax.f32 %v2450_v6, %v2463_v14 }
 0x3a5   :  { %2467 = vmax.xlane.f32.xlu0 %v2466_v11 }
 0x3a8   :  { %v2451_v7 = vpop.f32.mrf.mxu0  ;;  %v2464_v8 = vpop.f32.mrf.mxu1 }
 0x418   :  { %v2468_v16 = vpop.xlane.xlu0 %2467 }
 0x419   :  { %v2469_v17 = vsub.f32 %v2450_v6, %v2468_v16  ;;  %v2470_v56 = vsub.f32 %v2463_v14, %v2468_v16 }
 0x41b   :  { %v2471_v10 = vmul.f32 1.442695, %v2469_v17  ;;  %v2473_v18 = vmul.f32 1.442695, %v2470_v56 }
 0x41d   :  { %3979 = vpow2.f32 %v2471_v10 }
 0x41e   :  { %3981 = vpow2.f32 %v2473_v18 }
 0x423   :  { %v3980_v49 = vpop.eup %3979 }
 0x424   :  { %v3982_v24 = vpop.eup %3981 }
 0x425   :  { %v2475_v53 = vadd.f32 %v3982_v24, %v3980_v49 }
 0x427   :  { %2476 = vadd.xlane.f32.xlu0 %v2475_v53 }
 0x49a   :  { %v2477_v21 = vpop.xlane.xlu0 %2476 }
 0x49b   :  { %3983 = vlog2.f32 %v2477_v21 }
 0x4a1   :  { %v3984_v19 = vpop.eup %3983 }
 0x4a2   :  { %v2479_v63 = vmul.f32 0.6931472, %v3984_v19 }
 0x4a4   :  { %v2480_v20 = vsub.f32 %v2469_v17, %v2479_v63  ;;  %v2481_v22 = vsub.f32 %v2470_v56, %v2479_v63 }
 0x4a6   :  { %2482 = vst [vmem:[%s4474_s7] sm:$0xff] %v2480_v20 }
 0x4a7   :  { %2483 = vst [vmem:[%s4474_s7 + $0x8] sm:$0xff] %v2481_v22 }
 0x4a8   :  { %4109 = dma.done.wait [#allocation4], 512  }
 0x4a9   :  { %4110 = vsyncadd [#allocation4], 4294966784 }
 0x4aa   :  { %4111 = dma.done.wait [#allocation10], 512  }
 0x4ab   :  { %4112 = vsyncadd [#allocation10], 4294966784 }
 0x4ac   :  { %2522 = vsyncpa [#allocation3], 1 }
 0x4ad   :  { %2523 = vsyncpa [#allocation6], 1 }
 0x4ae   :  { %2524 = vsyncpa [#allocation4], 1 }
 0x4af   :  { %2525 = vsyncpa [#allocation10], 1 }

</bundles_post_ra>
